<compile_context>
chip_gen: v7x
topology: tpu7x:2x2x1
jax: 0.10.0
libtpu: 0.0.40
codegen_flags: <defaults>
</compile_context>

<pallas_src>
import jax
import jax.numpy as jnp
from jax import lax
from jax.experimental import pallas as pl
from jax.experimental.pallas import tpu as pltpu


def ssmf_kernel(xb_ref, w_ref, b_ref, o_ref):
    """One TH-row output block of the folded effective 3x3 conv.

    xb_ref : (TH+2, W+2, Cin)  bf16 input row block incl. 1-pixel halo
    w_ref  : (9, Cin, 128)     bf16 folded effective 3x3 weights (tap-major)
    b_ref  : (1, 128)          f32 folded bias (BN folded, eval mode)
    o_ref  : (TH, W, 128)      bf16 output row block (lane-dense 128)
    """
    th, w_out, cout = o_ref.shape
    cin = xb_ref.shape[-1]
    m = th * w_out

    # Nine direct (M, Cin) x (Cin, 128) MXU dots accumulated in f32.
    # No patch scratch, no lane-narrow masked stores; the vst slot is kept
    # free for the (lane-dense) output store.
    acc = jnp.zeros((m, cout), jnp.float32)
    for ky in range(3):
        for kx in range(3):
            tap = xb_ref[pl.ds(ky, th), pl.ds(kx, w_out), :].reshape(m, cin)
            acc = acc + jnp.dot(tap, w_ref[ky * 3 + kx],
                                preferred_element_type=jnp.float32)

    z = acc + b_ref[...]                                   # bias + ReLU in f32
    o_ref[...] = jnp.maximum(z, 0.0).reshape(th, w_out, cout).astype(o_ref.dtype)


def _pick_row_block(h, w, target_pixels=1024):
    """Largest divisor th of h with th*w <= target pixels, keeping >= 2 row
    blocks so both v7x TensorCores get work even at small batch."""
    best = 1
    for th in range(1, h + 1):
        if h % th:
            continue
        if th * w > max(target_pixels, w):
            continue
        if h // th < 2 and h > 1:
            continue
        best = th
    return best


def ssmf_forward(x_nchw, params, eps=1e-5, row_block=None, nchw_output=True):
    """NCHW in; NCHW out by default (PyTorch parity).  The kernel computes in
    NHWC with a bf16 output; pass nchw_output=False to skip the (bf16)
    re-transpose when the consumer can take NHWC (recommended: this block is
    HBM-bound and the transpose re-reads/re-writes the whole result)."""
    n, cin, h, w = x_nchw.shape

    # ---- Fold everything into one effective 3x3 conv (glue, not hot path).
    scale = params["gamma"] / jnp.sqrt(params["var"] + eps)            # (128,)
    w3 = params["w3"].reshape(67, 128) * scale[None, :]                # BN fold
    b3f = (params["b3"] - params["mean"]) * scale + params["beta"]     # (128,)
    w3a, w3b = w3[:3], w3[3:]                                          # (3,128),(64,128)

    w1 = params["w1"].reshape(cin, 3)
    w2 = params["w2"].reshape(9, cin, 64)                              # tap = ky*3+kx
    w_eff = jnp.einsum("tcf,fo->tco", w2, w3b)                         # (9,cin,128)
    w_eff = w_eff.at[4].add(w1 @ w3a)                                  # center tap
    b_eff = params["b1"] @ w3a + params["b2"] @ w3b + b3f              # (128,)

    w_eff = w_eff.astype(jnp.bfloat16)                                 # (9,cin,128)
    b_eff = b_eff.reshape(1, 128).astype(jnp.float32)

    # ---- NHWC; cast to bf16 BEFORE transpose/pad (halves prep HBM traffic).
    x = jnp.transpose(x_nchw.astype(jnp.bfloat16), (0, 2, 3, 1))       # (n,h,w,cin)
    xp = jnp.pad(x, ((0, 0), (1, 1), (1, 1), (0, 0)))                  # halo pad

    th = row_block if row_block is not None else _pick_row_block(h, w)
    assert h % th == 0, (h, th)
    nb = h // th

    # Materialize each TH-row block with its 1-row halo (cheap gather on the
    # small bf16 input) so the kernel's input block is small and the pipeline
    # prefetches the next block — no whole-image VMEM residency.
    rows = jnp.arange(nb)[:, None] * th + jnp.arange(th + 2)[None, :]  # (nb,th+2)
    xb = xp[:, rows].reshape(n * nb, th + 2, w + 2, cin)

    flops = 2 * n * h * w * 9 * cin * 128
    bytes_accessed = (xb.size * 2 + w_eff.size * 2 + b_eff.size * 4
                      + n * h * w * 128 * 2)

    out = pl.pallas_call(
        ssmf_kernel,
        out_shape=jax.ShapeDtypeStruct((n * nb, th, w, 128), jnp.bfloat16),
        grid=(n * nb,),
        in_specs=[
            pl.BlockSpec((None, th + 2, w + 2, cin), lambda g: (g, 0, 0, 0)),
            pl.BlockSpec((9, cin, 128), lambda g: (0, 0, 0)),
            pl.BlockSpec((1, 128), lambda g: (0, 0)),
        ],
        out_specs=pl.BlockSpec((None, th, w, 128), lambda g: (g, 0, 0, 0)),
        compiler_params=pltpu.CompilerParams(
            dimension_semantics=("parallel",),
            vmem_limit_bytes=32 * 1024 * 1024),
        cost_estimate=pl.CostEstimate(flops=flops, transcendentals=0,
                                      bytes_accessed=bytes_accessed),
    )(xb, w_eff, b_eff)

    out = out.reshape(n, h, w, 128)                                    # NHWC bf16
    if nchw_output:
        out = jnp.transpose(out, (0, 3, 1, 2))                         # bf16 transpose
    return out


def init_params(key, cin):
    ks = jax.random.split(key, 10)
    return {
        "w1": jax.random.normal(ks[0], (1, 1, cin, 3), jnp.float32) * 0.2,   # HWIO
        "b1": jax.random.normal(ks[1], (3,), jnp.float32) * 0.1,
        "w2": jax.random.normal(ks[2], (3, 3, cin, 64), jnp.float32) * 0.1,  # HWIO
        "b2": jax.random.normal(ks[3], (64,), jnp.float32) * 0.1,
        "w3": jax.random.normal(ks[4], (1, 1, 67, 128), jnp.float32) * 0.1,  # HWIO
        "b3": jax.random.normal(ks[5], (128,), jnp.float32) * 0.1,
        "gamma": jax.random.uniform(ks[6], (128,), jnp.float32, 0.5, 1.5),
        "beta": jax.random.normal(ks[7], (128,), jnp.float32) * 0.1,
        "mean": jax.random.normal(ks[8], (128,), jnp.float32) * 0.1,
        "var": jax.random.uniform(ks[9], (128,), jnp.float32, 0.5, 1.5),
    }


def ref_forward(x_nchw, p, eps=1e-5):
    """Pure-JAX reference (lax.conv), eval-mode BatchNorm, f32."""
    dn = ("NHWC", "HWIO", "NHWC")
    x = jnp.transpose(x_nchw, (0, 2, 3, 1)).astype(jnp.float32)
    f1 = lax.conv_general_dilated(x, p["w1"], (1, 1), "SAME",
                                  dimension_numbers=dn) + p["b1"]
    f2 = lax.conv_general_dilated(x, p["w2"], (1, 1), "SAME",
                                  dimension_numbers=dn) + p["b2"]
    f = jnp.concatenate([f1, f2], axis=-1)
    z = lax.conv_general_dilated(f, p["w3"], (1, 1), "SAME",
                                 dimension_numbers=dn) + p["b3"]
    z = (z - p["mean"]) / jnp.sqrt(p["var"] + eps) * p["gamma"] + p["beta"]
    z = jnp.maximum(z, 0.0)
    return jnp.transpose(z, (0, 3, 1, 2))


if __name__ == "__main__":
    key = jax.random.PRNGKey(0)
    k_x, k_p = jax.random.split(key)

    N, CIN, H, W = 2, 4, 16, 16
    x = jax.random.normal(k_x, (N, CIN, H, W), jnp.float32)   # NCHW, like PyTorch
    params = init_params(k_p, CIN)

    out = jax.block_until_ready(ssmf_forward(x, params))
    ref = jax.block_until_ready(ref_forward(x, params))

    assert out.shape == (N, 128, H, W), out.shape
    out_f32 = out.astype(jnp.float32)
    max_err = float(jnp.max(jnp.abs(out_f32 - ref)))
    # bf16 MXU inputs + bf16 output (f32 accumulation) -> loosened tolerance.
    assert jnp.allclose(out_f32, ref, rtol=5e-2, atol=5e-2), max_err
    print("KERNEL_OK")
</pallas_src>

<mosaic_0001>
module attributes {stable_mosaic.version = 11 : i64} {
  func.func @ssmf_kernel(%arg0: i32, %arg1: memref<1x10x18x4xbf16, #tpu.memory_space<vmem>>, %arg2: memref<9x4x128xbf16, #tpu.memory_space<vmem>>, %arg3: memref<1x128xf32, #tpu.memory_space<vmem>>, %arg4: memref<1x8x16x128xbf16, #tpu.memory_space<vmem>>) attributes {dimension_semantics = [#tpu.dimension_semantics<parallel>], iteration_bounds = array<i64: 4>, scalar_prefetch = 0 : i64, scratch_operands = 0 : i64, tpu.core_type = #tpu.core_type<tc>, window_params = [{transform_indices = @transform_0, window_bounds = array<i64: 1, 10, 18, 4>}, {pipeline_mode = #tpu.pipeline_mode<synchronous>, transform_indices = @transform_1, window_bounds = array<i64: 9, 4, 128>}, {pipeline_mode = #tpu.pipeline_mode<synchronous>, transform_indices = @transform_2, window_bounds = array<i64: 1, 128>}, {transform_indices = @transform_3, window_bounds = array<i64: 1, 8, 16, 128>}]} {
    %cst = arith.constant 0.000000e+00 : f32
    %0 = vector.broadcast %cst : f32 to vector<128x128xf32>
    %c0 = arith.constant 0 : index
    %c0_0 = arith.constant 0 : index
    %c0_1 = arith.constant 0 : index
    %c0_2 = arith.constant 0 : index
    %1 = vector.load %arg1[%c0, %c0_0, %c0_1, %c0_2] : memref<1x10x18x4xbf16, #tpu.memory_space<vmem>>, vector<1x8x16x4xbf16>
    %2 = vector.shape_cast %1 : vector<1x8x16x4xbf16> to vector<8x16x4xbf16>
    %3 = vector.shape_cast %2 : vector<8x16x4xbf16> to vector<128x4xbf16>
    %c0_3 = arith.constant 0 : index
    %c0_4 = arith.constant 0 : index
    %c0_5 = arith.constant 0 : index
    %4 = vector.load %arg2[%c0_3, %c0_4, %c0_5] : memref<9x4x128xbf16, #tpu.memory_space<vmem>>, vector<1x4x128xbf16>
    %5 = vector.shape_cast %4 : vector<1x4x128xbf16> to vector<4x128xbf16>
    %cst_6 = arith.constant dense<0.000000e+00> : vector<128x128xf32>
    %6 = tpu.matmul %3, %5, %cst_6 {dimension_numbers = #tpu.dot_dimension_numbers<[1], [0], [0], [1], [0, 0, 1, 1], [], []>} : vector<128x4xbf16>, vector<4x128xbf16>, vector<128x128xf32> -> vector<128x128xf32>
    %7 = arith.addf %0, %6 : vector<128x128xf32>
    %c0_7 = arith.constant 0 : index
    %c0_8 = arith.constant 0 : index
    %c1 = arith.constant 1 : index
    %c0_9 = arith.constant 0 : index
    %8 = vector.load %arg1[%c0_7, %c0_8, %c1, %c0_9] : memref<1x10x18x4xbf16, #tpu.memory_space<vmem>>, vector<1x8x16x4xbf16>
    %9 = vector.shape_cast %8 : vector<1x8x16x4xbf16> to vector<8x16x4xbf16>
    %10 = vector.shape_cast %9 : vector<8x16x4xbf16> to vector<128x4xbf16>
    %c1_10 = arith.constant 1 : index
    %c0_11 = arith.constant 0 : index
    %c0_12 = arith.constant 0 : index
    %11 = vector.load %arg2[%c1_10, %c0_11, %c0_12] : memref<9x4x128xbf16, #tpu.memory_space<vmem>>, vector<1x4x128xbf16>
    %12 = vector.shape_cast %11 : vector<1x4x128xbf16> to vector<4x128xbf16>
    %cst_13 = arith.constant dense<0.000000e+00> : vector<128x128xf32>
    %13 = tpu.matmul %10, %12, %cst_13 {dimension_numbers = #tpu.dot_dimension_numbers<[1], [0], [0], [1], [0, 0, 1, 1], [], []>} : vector<128x4xbf16>, vector<4x128xbf16>, vector<128x128xf32> -> vector<128x128xf32>
    %14 = arith.addf %7, %13 : vector<128x128xf32>
    %c0_14 = arith.constant 0 : index
    %c0_15 = arith.constant 0 : index
    %c2 = arith.constant 2 : index
    %c0_16 = arith.constant 0 : index
    %15 = vector.load %arg1[%c0_14, %c0_15, %c2, %c0_16] : memref<1x10x18x4xbf16, #tpu.memory_space<vmem>>, vector<1x8x16x4xbf16>
    %16 = vector.shape_cast %15 : vector<1x8x16x4xbf16> to vector<8x16x4xbf16>
    %17 = vector.shape_cast %16 : vector<8x16x4xbf16> to vector<128x4xbf16>
    %c2_17 = arith.constant 2 : index
    %c0_18 = arith.constant 0 : index
    %c0_19 = arith.constant 0 : index
    %18 = vector.load %arg2[%c2_17, %c0_18, %c0_19] : memref<9x4x128xbf16, #tpu.memory_space<vmem>>, vector<1x4x128xbf16>
    %19 = vector.shape_cast %18 : vector<1x4x128xbf16> to vector<4x128xbf16>
    %cst_20 = arith.constant dense<0.000000e+00> : vector<128x128xf32>
    %20 = tpu.matmul %17, %19, %cst_20 {dimension_numbers = #tpu.dot_dimension_numbers<[1], [0], [0], [1], [0, 0, 1, 1], [], []>} : vector<128x4xbf16>, vector<4x128xbf16>, vector<128x128xf32> -> vector<128x128xf32>
    %21 = arith.addf %14, %20 : vector<128x128xf32>
    %c0_21 = arith.constant 0 : index
    %c1_22 = arith.constant 1 : index
    %c0_23 = arith.constant 0 : index
    %c0_24 = arith.constant 0 : index
    %22 = vector.load %arg1[%c0_21, %c1_22, %c0_23, %c0_24] : memref<1x10x18x4xbf16, #tpu.memory_space<vmem>>, vector<1x8x16x4xbf16>
    %23 = vector.shape_cast %22 : vector<1x8x16x4xbf16> to vector<8x16x4xbf16>
    %24 = vector.shape_cast %23 : vector<8x16x4xbf16> to vector<128x4xbf16>
    %c3 = arith.constant 3 : index
    %c0_25 = arith.constant 0 : index
    %c0_26 = arith.constant 0 : index
    %25 = vector.load %arg2[%c3, %c0_25, %c0_26] : memref<9x4x128xbf16, #tpu.memory_space<vmem>>, vector<1x4x128xbf16>
    %26 = vector.shape_cast %25 : vector<1x4x128xbf16> to vector<4x128xbf16>
    %cst_27 = arith.constant dense<0.000000e+00> : vector<128x128xf32>
    %27 = tpu.matmul %24, %26, %cst_27 {dimension_numbers = #tpu.dot_dimension_numbers<[1], [0], [0], [1], [0, 0, 1, 1], [], []>} : vector<128x4xbf16>, vector<4x128xbf16>, vector<128x128xf32> -> vector<128x128xf32>
    %28 = arith.addf %21, %27 : vector<128x128xf32>
    %c0_28 = arith.constant 0 : index
    %c1_29 = arith.constant 1 : index
    %c1_30 = arith.constant 1 : index
    %c0_31 = arith.constant 0 : index
    %29 = vector.load %arg1[%c0_28, %c1_29, %c1_30, %c0_31] : memref<1x10x18x4xbf16, #tpu.memory_space<vmem>>, vector<1x8x16x4xbf16>
    %30 = vector.shape_cast %29 : vector<1x8x16x4xbf16> to vector<8x16x4xbf16>
    %31 = vector.shape_cast %30 : vector<8x16x4xbf16> to vector<128x4xbf16>
    %c4 = arith.constant 4 : index
    %c0_32 = arith.constant 0 : index
    %c0_33 = arith.constant 0 : index
    %32 = vector.load %arg2[%c4, %c0_32, %c0_33] : memref<9x4x128xbf16, #tpu.memory_space<vmem>>, vector<1x4x128xbf16>
    %33 = vector.shape_cast %32 : vector<1x4x128xbf16> to vector<4x128xbf16>
    %cst_34 = arith.constant dense<0.000000e+00> : vector<128x128xf32>
    %34 = tpu.matmul %31, %33, %cst_34 {dimension_numbers = #tpu.dot_dimension_numbers<[1], [0], [0], [1], [0, 0, 1, 1], [], []>} : vector<128x4xbf16>, vector<4x128xbf16>, vector<128x128xf32> -> vector<128x128xf32>
    %35 = arith.addf %28, %34 : vector<128x128xf32>
    %c0_35 = arith.constant 0 : index
    %c1_36 = arith.constant 1 : index
    %c2_37 = arith.constant 2 : index
    %c0_38 = arith.constant 0 : index
    %36 = vector.load %arg1[%c0_35, %c1_36, %c2_37, %c0_38] : memref<1x10x18x4xbf16, #tpu.memory_space<vmem>>, vector<1x8x16x4xbf16>
    %37 = vector.shape_cast %36 : vector<1x8x16x4xbf16> to vector<8x16x4xbf16>
    %38 = vector.shape_cast %37 : vector<8x16x4xbf16> to vector<128x4xbf16>
    %c5 = arith.constant 5 : index
    %c0_39 = arith.constant 0 : index
    %c0_40 = arith.constant 0 : index
    %39 = vector.load %arg2[%c5, %c0_39, %c0_40] : memref<9x4x128xbf16, #tpu.memory_space<vmem>>, vector<1x4x128xbf16>
    %40 = vector.shape_cast %39 : vector<1x4x128xbf16> to vector<4x128xbf16>
    %cst_41 = arith.constant dense<0.000000e+00> : vector<128x128xf32>
    %41 = tpu.matmul %38, %40, %cst_41 {dimension_numbers = #tpu.dot_dimension_numbers<[1], [0], [0], [1], [0, 0, 1, 1], [], []>} : vector<128x4xbf16>, vector<4x128xbf16>, vector<128x128xf32> -> vector<128x128xf32>
    %42 = arith.addf %35, %41 : vector<128x128xf32>
    %c0_42 = arith.constant 0 : index
    %c2_43 = arith.constant 2 : index
    %c0_44 = arith.constant 0 : index
    %c0_45 = arith.constant 0 : index
    %43 = vector.load %arg1[%c0_42, %c2_43, %c0_44, %c0_45] : memref<1x10x18x4xbf16, #tpu.memory_space<vmem>>, vector<1x8x16x4xbf16>
    %44 = vector.shape_cast %43 : vector<1x8x16x4xbf16> to vector<8x16x4xbf16>
    %45 = vector.shape_cast %44 : vector<8x16x4xbf16> to vector<128x4xbf16>
    %c6 = arith.constant 6 : index
    %c0_46 = arith.constant 0 : index
    %c0_47 = arith.constant 0 : index
    %46 = vector.load %arg2[%c6, %c0_46, %c0_47] : memref<9x4x128xbf16, #tpu.memory_space<vmem>>, vector<1x4x128xbf16>
    %47 = vector.shape_cast %46 : vector<1x4x128xbf16> to vector<4x128xbf16>
    %cst_48 = arith.constant dense<0.000000e+00> : vector<128x128xf32>
    %48 = tpu.matmul %45, %47, %cst_48 {dimension_numbers = #tpu.dot_dimension_numbers<[1], [0], [0], [1], [0, 0, 1, 1], [], []>} : vector<128x4xbf16>, vector<4x128xbf16>, vector<128x128xf32> -> vector<128x128xf32>
    %49 = arith.addf %42, %48 : vector<128x128xf32>
    %c0_49 = arith.constant 0 : index
    %c2_50 = arith.constant 2 : index
    %c1_51 = arith.constant 1 : index
    %c0_52 = arith.constant 0 : index
    %50 = vector.load %arg1[%c0_49, %c2_50, %c1_51, %c0_52] : memref<1x10x18x4xbf16, #tpu.memory_space<vmem>>, vector<1x8x16x4xbf16>
    %51 = vector.shape_cast %50 : vector<1x8x16x4xbf16> to vector<8x16x4xbf16>
    %52 = vector.shape_cast %51 : vector<8x16x4xbf16> to vector<128x4xbf16>
    %c7 = arith.constant 7 : index
    %c0_53 = arith.constant 0 : index
    %c0_54 = arith.constant 0 : index
    %53 = vector.load %arg2[%c7, %c0_53, %c0_54] : memref<9x4x128xbf16, #tpu.memory_space<vmem>>, vector<1x4x128xbf16>
    %54 = vector.shape_cast %53 : vector<1x4x128xbf16> to vector<4x128xbf16>
    %cst_55 = arith.constant dense<0.000000e+00> : vector<128x128xf32>
    %55 = tpu.matmul %52, %54, %cst_55 {dimension_numbers = #tpu.dot_dimension_numbers<[1], [0], [0], [1], [0, 0, 1, 1], [], []>} : vector<128x4xbf16>, vector<4x128xbf16>, vector<128x128xf32> -> vector<128x128xf32>
    %56 = arith.addf %49, %55 : vector<128x128xf32>
    %c0_56 = arith.constant 0 : index
    %c2_57 = arith.constant 2 : index
    %c2_58 = arith.constant 2 : index
    %c0_59 = arith.constant 0 : index
    %57 = vector.load %arg1[%c0_56, %c2_57, %c2_58, %c0_59] : memref<1x10x18x4xbf16, #tpu.memory_space<vmem>>, vector<1x8x16x4xbf16>
    %58 = vector.shape_cast %57 : vector<1x8x16x4xbf16> to vector<8x16x4xbf16>
    %59 = vector.shape_cast %58 : vector<8x16x4xbf16> to vector<128x4xbf16>
    %c8 = arith.constant 8 : index
    %c0_60 = arith.constant 0 : index
    %c0_61 = arith.constant 0 : index
    %60 = vector.load %arg2[%c8, %c0_60, %c0_61] : memref<9x4x128xbf16, #tpu.memory_space<vmem>>, vector<1x4x128xbf16>
    %61 = vector.shape_cast %60 : vector<1x4x128xbf16> to vector<4x128xbf16>
    %cst_62 = arith.constant dense<0.000000e+00> : vector<128x128xf32>
    %62 = tpu.matmul %59, %61, %cst_62 {dimension_numbers = #tpu.dot_dimension_numbers<[1], [0], [0], [1], [0, 0, 1, 1], [], []>} : vector<128x4xbf16>, vector<4x128xbf16>, vector<128x128xf32> -> vector<128x128xf32>
    %63 = arith.addf %56, %62 : vector<128x128xf32>
    %c0_63 = arith.constant 0 : index
    %c0_64 = arith.constant 0 : index
    %64 = vector.load %arg3[%c0_63, %c0_64] : memref<1x128xf32, #tpu.memory_space<vmem>>, vector<1x128xf32>
    %65 = vector.broadcast %64 : vector<1x128xf32> to vector<128x128xf32>
    %66 = arith.addf %63, %65 : vector<128x128xf32>
    %cst_65 = arith.constant 0.000000e+00 : f32
    %67 = vector.broadcast %cst_65 : f32 to vector<128x128xf32>
    %68 = arith.maximumf %66, %67 : vector<128x128xf32>
    %69 = vector.shape_cast %68 : vector<128x128xf32> to vector<8x16x128xf32>
    %70 = arith.truncf %69 : vector<8x16x128xf32> to vector<8x16x128xbf16>
    %c0_66 = arith.constant 0 : index
    %c0_67 = arith.constant 0 : index
    %c0_68 = arith.constant 0 : index
    %c0_69 = arith.constant 0 : index
    %71 = vector.load %arg4[%c0_66, %c0_67, %c0_68, %c0_69] : memref<1x8x16x128xbf16, #tpu.memory_space<vmem>>, vector<1x8x16x128xbf16>
    %72 = vector.shape_cast %71 : vector<1x8x16x128xbf16> to vector<8x16x128xbf16>
    %73 = vector.shape_cast %70 : vector<8x16x128xbf16> to vector<1x8x16x128xbf16>
    tpu.vector_store %arg4[%c0_66, %c0_67, %c0_68, %c0_69], %73 {strides = array<i32>} : memref<1x8x16x128xbf16, #tpu.memory_space<vmem>>, vector<1x8x16x128xbf16>,
    return
  }
  func.func @transform_0(%arg0: i32) -> (i32, i32, i32, i32) {
    %c0_i32 = arith.constant 0 : i32
    %c0_i32_0 = arith.constant 0 : i32
    %c0_i32_1 = arith.constant 0 : i32
    %c0_i32_2 = arith.constant 0 : i32
    return %arg0, %c0_i32, %c0_i32_0, %c0_i32_1 : i32, i32, i32, i32
  }
  func.func @transform_1(%arg0: i32) -> (i32, i32, i32) {
    %c0_i32 = arith.constant 0 : i32
    %c0_i32_0 = arith.constant 0 : i32
    %c0_i32_1 = arith.constant 0 : i32
    %c0_i32_2 = arith.constant 0 : i32
    return %c0_i32, %c0_i32_0, %c0_i32_1 : i32, i32, i32
  }
  func.func @transform_2(%arg0: i32) -> (i32, i32) {
    %c0_i32 = arith.constant 0 : i32
    %c0_i32_0 = arith.constant 0 : i32
    %c0_i32_1 = arith.constant 0 : i32
    return %c0_i32, %c0_i32_0 : i32, i32
  }
  func.func @transform_3(%arg0: i32) -> (i32, i32, i32, i32) {
    %c0_i32 = arith.constant 0 : i32
    %c0_i32_0 = arith.constant 0 : i32
    %c0_i32_1 = arith.constant 0 : i32
    %c0_i32_2 = arith.constant 0 : i32
    return %arg0, %c0_i32, %c0_i32_0, %c0_i32_1 : i32, i32, i32, i32
  }
}

</mosaic_0001>

<bundles_post_ra>
// kernel: tpu_custom_call.1
= control target key start
LH: loop header
LB: loop body
LE: loop exit
PB: predicated region body
PF: predicated region fallthrough
CT: control target
= control target key end

     0   :  { %8 = vsyncpa [#allocation3], 0  ;;  %s4717_s0 = inlined_call_operand.vmem [shape: bf16[4,10,18,4], index: 0, kind: input, shape index: {}]   ;;  %s4718_s1 = inlined_call_operand.vmem [shape: bf16[9,4,128], index: 1, kind: input, shape index: {}]   ;;  %s4719_s2 = inlined_call_operand.vmem [shape: f32[1,128], index: 2, kind: input, shape index: {}]   ;;  %s4720_s3 = inlined_call_operand.hbm [shape: bf16[4,8,16,128], index: 3, kind: output, shape index: {}]  }
   0x1   :  { %10 = vsyncpa [#allocation3 + $0x1], 0  ;;  %s3721_s12 = smov 0   ;;  %s3723_s13 = smov 0  }
   0x2   :  { %s3725_s14 = smov 0   ;;  %s3727_s15 = smov 0  }
   0x3 LB: > { %s3742_s16 = sadd.s32 4294967295, %s3696_s15   ;;  %s2820_s17 = sadd.s32 4294967294, %s3696_s15   ;;  %s3696_s15 = sphi %s3727_s15, %s4748_s15   ;;  %s3692_s14 = sphi %s3725_s14, %s4747_s14   ;;  %s3688_s13 = sphi %s3723_s13, %s4746_s13   ;;  %s3684_s12 = sphi %s3721_s12, %s4745_s12  }
   0x4   : > { %s3746_s18 = sadd.s32 1, %s3696_s15   ;;  %s91_s19 = sadd.s32 1, %s3692_s14 }
   0x5   : > { %s88_s20 = ssub.s32 %s3696_s15, %s3746_s18  ;;  %p101_p0 = scmp.ne.s32.totalorder %s3692_s14, %s3688_s13 }
   0x6   : > { %p89_p1 = scmp.eq.s32.totalorder %s88_s20, 0  ;;  %p102_p2 = scmp.eq.s32.totalorder %s3742_s16, 3 }
   0x7   : > { %p107_p3 = scmp.ne.s32.totalorder %s3688_s13, %s3684_s12  ;;  %p108_p4 = scmp.eq.s32.totalorder %s2820_s17, 3 }
   0x8   : > { %s3757_s21 = scalar_select %p89_p1, %s3692_s14, %s91_s19  }
   0x9   : > { %p3759_p5 = por %p102_p2, %p101_p0  ;;  %p3763_p6 = por %p108_p4, %p107_p3 }
   0xa   : > { %p2823_p7 = scmp.ge.s32.totalorder %s3696_s15, 1  ;;  %p140_p8 = scmp.lt.s32.totalorder %s3696_s15, 5 }
   0xc   : > { %p141_p9 = pnand %p2823_p7, %p140_p8 }
   0xe   : > { %144 = sbr.rel (%p141_p9) target bundleno = 442 (0x1ba), region = 32 }
  0x15   : > { %v2826_v0 = vld [vmem:[%s4718_s1 + $0x2] sm:$0x3]  ;;  %vm441_vm0 = vcmask 1041408   ;;  %v2941_v1 = vld [vmem:[%s4718_s1 + $0x8] sm:$0x3]  ;;  %p164_p10 = scmp.lt.s32.totalorder %s3742_s16, 3 }
  0x16   : > { %3557 = vmatprep.subr.msk.bf16.mxu1 %vm441_vm0, %v2826_v0  ;;  %3561 = vmatprep.subr.msk.bf16.mxu0 %vm441_vm0, %v2941_v1  ;;  %v443_v2 = vsel %vm441_vm0, %v2826_v0, 0  ;;  %v3780_v3 = vsel %vm441_vm0, %v2941_v1, 0  ;;  %v186_v4 = vld [vmem:[%s4718_s1] sm:$0x3]  ;;  %v2974_v5 = vld [vmem:[%s4718_s1 + $0xa] sm:$0x3] }
  0x17   : > { %3266 = vmatpush3.bf16.msra.mxu1 %v443_v2  ;;  %3338 = vmatpush3.bf16.msra.mxu0 %v3780_v3  ;;  %s165_s28 = scalar_select %p164_p10, %s3742_s16, 3  ;;  %vm195_vm1 = vsmask.f32 3328  ;;  %vm196_vm2 = vsmask.f32 7440  ;;  %vm416_vm3 = vcmask 31744  }
  0x18   : > { %3558 = vmatprep.subr.msk.bf16.mxu1 %vm441_vm0, %v186_v4  ;;  %3563 = vmatprep.subr.msk.bf16.mxu0 %vm441_vm0, %v2974_v5  ;;  %v3819_v17 = vsel %vm441_vm0, %v186_v4, 0  ;;  %v3825_v26 = vld [vmem:[%s4718_s1 + $0xc] sm:$0x3]  ;;  %vm3834_vm4 = vmor %vm195_vm1, %vm196_vm2  ;;  %v3842_v37 = vsel %vm441_vm0, %v2974_v5, 0  ;;  %vm730_vm5 = vcmask 1042432   ;;  %vm731_vm6 = vcmask 1046532  }
  0x19   : > { %s3567_s6 = smul.u32 120, %s165_s28  ;;  %v3846_v41 = vsel %vm441_vm0, %v3825_v26, 0  ;;  %vm3989_vm7 = vmor %vm730_vm5, %vm731_vm6  ;;  %v4634_v32 = vld [vmem:[%s4719_s2] ss:$0 sm:$0xff]  ;;  %s3698_s24 = smov [#allocation2]  }
  0x1a   : > { %s3638_s25 = sshll.u32 %s3698_s24, 4  ;;  %s3639_s25 = int_to_ptr.vmem [resolvable:$false] %s3638_s25 }
  0x1b   : > { %s3795_s9 = scalar_lea.vmem %s4717_s0, %s3567_s6  ;;  %s161_s6 = sand.u32 1, %s3688_s13  }
  0x1c   : > { %v3798_v6 = vld [vmem:[%s3795_s9] sm:$0xf]  ;;  %v3801_v7 = vld [vmem:[%s3795_s9 + $0x4] sm:$0xf]  ;;  %v3804_v8 = vld [vmem:[%s3795_s9 + $0x8] sm:$0x1] }
  0x1d   : > { %v199_v9 = vshrl.u32 %v3798_v6, 16  ;;  %v202_v10 = vshll.u32 %v3798_v6, 16  ;;  %v208_v11 = vshll.u32 %v3801_v7, 16  ;;  %v212_v12 = vshrl.u32 %v3801_v7, 16  ;;  %v2917_v13 = vld [vmem:[%s3795_s9 + $0xc] sm:$0xf] }
  0x1e   : > { %v218_v14 = vshll.u32 %v3804_v8, 16  ;;  %v3813_v15 = vld [vmem:[%s3795_s9 + $0x10] sm:$0xf]  ;;  %v3816_v16 = vld [vmem:[%s3795_s9 + $0x14] sm:$0x1]  ;;  %v1179_v23 = vshrl.u32 %v2917_v13, 16 }
  0x1f   : > { %v201_v18 = vrot.slane %v199_v9, 4  ;;  %v204_v19 = vrot.slane %v202_v10, 5  ;;  %v210_v20 = vrot.slane %v208_v11, 5  ;;  %v214_v21 = vrot.slane %v212_v12, 4  ;;  %v3830_v31 = vld [vmem:[%s3795_s9 + $0xc] sm:$0xf] }
  0x20   : > { %v220_v22 = vrot.slane %v218_v14, 5  ;;  %v1182_v24 = vshll.u32 %v2917_v13, 16  ;;  %v1188_v25 = vshll.u32 %v3813_v15, 16  ;;  %v1192_v29 = vshrl.u32 %v3813_v15, 16  ;;  %v3839_v36 = vld [vmem:[%s3795_s9 + $0x10] sm:$0xf] }
  0x21   : > { %v205_v27 = vor.u32 %v204_v19, %v201_v18  ;;  %v215_v28 = vor.u32 %v214_v21, %v210_v20  ;;  %v1198_v30 = vshll.u32 %v3816_v16, 16  ;;  %v1181_v33 = vrot.slane %v1179_v23, 4  ;;  %v3849_v44 = vld [vmem:[%s3795_s9 + $0x14] sm:$0x1]  ;;  %v2920_v55 = vld [vmem:[%s3795_s9 + $0x18] sm:$0xf] }
  0x22   : > { %v1184_v34 = vrot.slane %v1182_v24, 5  ;;  %v1190_v35 = vrot.slane %v1188_v25, 5  ;;  %v1194_v40 = vrot.slane %v1192_v29, 4  ;;  %v223_v45 = vshrl.u32 %v3830_v31, 16  ;;  %v3862_v60 = vld [vmem:[%s3795_s9 + $0x1c] sm:$0xf] }
  0x23   : > { %v206_v38 = vrot.slane %v205_v27, 4  ;;  %v216_v39 = vrot.slane %v215_v28, 4  ;;  %v1200_v43 = vrot.slane %v1198_v30, 5  ;;  %v226_v46 = vshll.u32 %v3830_v31, 16  ;;  %v3870_v1 = vld [vmem:[%s3795_s9 + $0x20] sm:$0x1] }
  0x24   : > { %v1185_v42 = vor.u32 %v1184_v34, %v1181_v33  ;;  %v1195_v49 = vor.u32 %v1194_v40, %v1190_v35  ;;  %v232_v50 = vshll.u32 %v3839_v36, 16  ;;  %v225_v53 = vrot.slane %v223_v45, 4  ;;  %v3878_v21 = vld [vmem:[%s3795_s9 + $0x18] sm:$0xf]  ;;  %v3885_v27 = vld [vmem:[%s3795_s9 + $0x1c] sm:$0xf] }
  0x25   : > { %v211_v47 = vsel %vm3834_vm4, %v206_v38, %v210_v20  ;;  %v221_v48 = vsel %vm3834_vm4, %v216_v39, %v220_v22  ;;  %v228_v54 = vrot.slane %v226_v46, 5  ;;  %v236_v58 = vshrl.u32 %v3839_v36, 16  ;;  %v3893_v38 = vld [vmem:[%s3795_s9 + $0x20] sm:$0x1]  ;;  %s2824_s7 = sshll.u32 %s161_s6, 6  ;;  %s3640_s26 = scalar_lea.vmem %s3639_s25, 2048 }
  0x26   : > { %v2827_v51 = vcombine.low %v211_v47, %v221_v48  ;;  %v1186_v52 = vrot.slane %v1185_v42, 4  ;;  %v1196_v56 = vrot.slane %v1195_v49, 4  ;;  %v234_v57 = vrot.slane %v232_v50, 5  ;;  %v2923_v47 = vld [vmem:[%s3795_s9 + $0x24] sm:$0xf]  ;;  %s4643_s8 = scalar_lea.vmem [#allocation2], %s2824_s7 }
  0x27   : > { %v242_v59 = vshll.u32 %v3849_v44, 16  ;;  %v1570_v62 = vrot.slane %v3813_v15, 5  ;;  %v1573_v63 = vrot.slane %v3816_v16, 5  ;;  %v229_v0 = vor.u32 %v228_v54, %v225_v53  ;;  %s2758_s10 = sshll.u32 %s4643_s8, 4  ;;  %s4670_s10 = int_to_ptr.vmem [resolvable:$true] %s2758_s10 }
  0x28   : > { %3267 = vmatprep.mubr.msk.bf16.mxu1 %vm416_vm3, %v2827_v51  ;;  %v1191_v61 = vsel %vm3834_vm4, %v1186_v52, %v1190_v35  ;;  %v1201_v2 = vsel %vm3834_vm4, %v1196_v56, %v1200_v43  ;;  %v238_v4 = vrot.slane %v236_v58, 4  ;;  %v1203_v9 = vshrl.u32 %v2920_v55, 16  ;;  %v3903_v52 = vld [vmem:[%s3795_s9 + $0x28] sm:$0xf]  ;;  %s3634_s20 = scalar_lea.vmem %s4670_s10, 1024  ;;  %p3641_p0 = scmp.lt.s32.totalorder %s4670_s10, %s3639_s25 }
  0x29   : > { %v244_v5 = vrot.slane %v242_v59, 5  ;;  %v2942_v10 = vcombine.low %v1191_v61, %v1201_v2  ;;  %v230_v11 = vrot.slane %v229_v0, 4  ;;  %v1206_v12 = vshll.u32 %v2920_v55, 16  ;;  %v3915_v61 = vld [vmem:[%s3795_s9 + $0x2c] sm:$0x1]  ;;  %p3635_p11 = scmp.ne.s32.totalorder %s4670_s10, %s3634_s20  ;;  %p3642_p1 = scmp.lt.s32.totalorder %s3640_s26, %s3634_s20 }
  0x2a   : > { %v1212_v13 = vshll.u32 %v3862_v60, 16  ;;  %v239_v14 = vor.u32 %v238_v4, %v234_v57  ;;  %v1205_v18 = vrot.slane %v1203_v9, 4  ;;  %v1216_v19 = vshrl.u32 %v3862_v60, 16 }
  0x2b   : > { %v1222_v20 = vshll.u32 %v3870_v1, 16  ;;  %3339 = vmatprep.mubr.msk.bf16.mxu0 %vm416_vm3, %v2942_v10  ;;  %v235_v22 = vsel %vm3834_vm4, %v230_v11, %v234_v57  ;;  %v1208_v23 = vrot.slane %v1206_v12, 5  ;;  %v1577_v25 = vrot.slane %v3862_v60, 5  ;;  %v3909_v57 = vld [vmem:[%s4718_s1 + $0x4] sm:$0x3]  ;;  %p3636_p12 = pnand %p3635_p11, %p3759_p5  ;;  %p3643_p2 = por %p3642_p1, %p3641_p0 }
  0x2c   : > { %v1214_v24 = vrot.slane %v1212_v13, 5  ;;  %v240_v28 = vrot.slane %v239_v14, 4  ;;  %v1218_v29 = vrot.slane %v1216_v19, 4  ;;  %v1580_v33 = vrot.slane %v3870_v1, 5  ;;  %v3922_v11 = vld [vmem:[%s3795_s9 + $0x24] sm:$0xf] }
  0x2d   : > { %v1224_v30 = vrot.slane %v1222_v20, 5  ;;  %v1209_v34 = vor.u32 %v1208_v23, %v1205_v18  ;;  %v3890_v35 = vrot.slane %v1577_v25, 4  ;;  %v247_v39 = vshrl.u32 %v3878_v21, 16  ;;  %v3925_v19 = vld [vmem:[%s3795_s9 + $0x28] sm:$0xf]  ;;  %p3637_p13 = pneg %p3636_p12 }
  0x2e   : > { %v250_v40 = vshll.u32 %v3878_v21, 16  ;;  %v245_v42 = vsel %vm3834_vm4, %v240_v28, %v244_v5  ;;  %v1219_v43 = vor.u32 %v1218_v29, %v1214_v24  ;;  %v256_v45 = vshll.u32 %v3885_v27, 16  ;;  %v3935_v29 = vld [vmem:[%s3795_s9 + $0x2c] sm:$0x1] }
  0x2f   : > { %v260_v46 = vshrl.u32 %v3885_v27, 16  ;;  %v2828_v48 = vcombine.low %v235_v22, %v245_v42  ;;  %v1210_v49 = vrot.slane %v1209_v34, 4  ;;  %v249_v50 = vrot.slane %v247_v39, 4  ;;  %p3644_p3 = pnand %p3643_p2, %p3637_p13 }
  0x30   : > { %v252_v51 = vrot.slane %v250_v40, 5  ;;  %v1220_v53 = vrot.slane %v1219_v43, 4  ;;  %v258_v54 = vrot.slane %v256_v45, 5  ;;  %v266_v56 = vshll.u32 %v3893_v38, 16  ;;  %v2926_v45 = vld [vmem:[%s3795_s9 + $0x30] sm:$0xf] }
  0x31   : > { %v262_v55 = vrot.slane %v260_v46, 4  ;;  %3268 = vmatmul.mubr.msk.bf16.vlgmr.msra.gmra.mrb[0].mxu1 %vm416_vm3, %v2828_v48  ;;  %v1215_v58 = vsel %vm3834_vm4, %v1210_v49, %v1214_v24  ;;  %v1227_v0 = vshrl.u32 %v2923_v47, 16  ;;  %v1230_v2 = vshll.u32 %v2923_v47, 16 }
  0x32   : > { %v253_v59 = vor.u32 %v252_v51, %v249_v50  ;;  %3284 = vmatpush3.bf16.msra.mxu1 %v3819_v17  ;;  %v1225_v4 = vsel %vm3834_vm4, %v1220_v53, %v1224_v30  ;;  %v268_v9 = vrot.slane %v266_v56, 5  ;;  %v1236_v10 = vshll.u32 %v3903_v52, 16  ;;  %v3945_v50 = vld [vmem:[%s3795_s9 + $0x34] sm:$0xf] }
  0x33   : > { %v263_v5 = vor.u32 %v262_v55, %v258_v54  ;;  %v2943_v12 = vcombine.low %v1215_v58, %v1225_v4  ;;  %v1229_v14 = vrot.slane %v1227_v0, 4  ;;  %v1232_v18 = vrot.slane %v1230_v2, 5  ;;  %3559 = vmatprep.subr.msk.bf16.mxu1 %vm441_vm0, %v3909_v57  ;;  %v3955_v58 = vld [vmem:[%s3795_s9 + $0x38] sm:$0x1] }
  0x34   : > { %v254_v13 = vrot.slane %v253_v59, 4  ;;  %v1238_v20 = vrot.slane %v1236_v10, 5  ;;  %v1240_v22 = vshrl.u32 %v3903_v52, 16  ;;  %v1246_v23 = vshll.u32 %v3915_v61, 16 }
  0x35   : > { %v264_v17 = vrot.slane %v263_v5, 4  ;;  %3340 = vmatmul.mubr.msk.bf16.vlgmr.msra.gmra.mrb[0].mxu0 %vm416_vm3, %v2943_v12  ;;  %v1233_v28 = vor.u32 %v1232_v18, %v1229_v14  ;;  %v271_v30 = vshrl.u32 %v3922_v11, 16  ;;  %v274_v34 = vshll.u32 %v3922_v11, 16  ;;  %v3960_v14 = vld [vmem:[%s3795_s9 + $0x30] sm:$0xf] }
  0x36   : > { %v259_v24 = vsel %vm3834_vm4, %v254_v13, %v258_v54  ;;  %3356 = vmatpush3.bf16.msra.mxu0 %v3842_v37  ;;  %v1242_v40 = vrot.slane %v1240_v22, 4  ;;  %v1248_v42 = vrot.slane %v1246_v23, 5  ;;  %v280_v43 = vshll.u32 %v3925_v19, 16  ;;  %v3966_v23 = vld [vmem:[%s3795_s9 + $0x34] sm:$0xf] }
  0x37   : > { %v269_v39 = vsel %vm3834_vm4, %v264_v17, %v268_v9  ;;  %v1234_v47 = vrot.slane %v1233_v28, 4  ;;  %v273_v48 = vrot.slane %v271_v30, 4  ;;  %v276_v49 = vrot.slane %v274_v34, 5  ;;  %3564 = vmatprep.subr.msk.bf16.mxu0 %vm441_vm0, %v3825_v26 }
  0x38   : > { %v2829_v46 = vcombine.low %v259_v24, %v269_v39  ;;  %v1243_v37 = vor.u32 %v1242_v40, %v1238_v20  ;;  %v282_v51 = vrot.slane %v280_v43, 5  ;;  %v284_v53 = vshrl.u32 %v3925_v19, 16  ;;  %v3971_v39 = vld [vmem:[%s3795_s9 + $0x38] sm:$0x1] }
  0x39   : > { %v290_v54 = vshll.u32 %v3935_v29, 16  ;;  %v1239_v55 = vsel %vm3834_vm4, %v1234_v47, %v1238_v20  ;;  %v277_v56 = vor.u32 %v276_v49, %v273_v48  ;;  %v1251_v59 = vshrl.u32 %v2926_v45, 16 }
  0x3a   : > { %3271 = vmatprep.mubr.msk.bf16.mxu1 %vm416_vm3, %v2829_v46  ;;  %v1254_v0 = vshll.u32 %v2926_v45, 16  ;;  %v1244_v2 = vrot.slane %v1243_v37, 4  ;;  %v286_v26 = vrot.slane %v284_v53, 4  ;;  %v1260_v5 = vshll.u32 %v3945_v50, 16  ;;  %v2958_v37 = vld [vmem:[%s3795_s9 + $0xc] sm:$0xe] }
  0x3b   : > { %v292_v4 = vrot.slane %v290_v54, 5  ;;  %v278_v9 = vrot.slane %v277_v56, 4  ;;  %v1253_v10 = vrot.slane %v1251_v59, 4  ;;  %v1264_v13 = vshrl.u32 %v3945_v50, 16  ;;  %v3983_v56 = vld [vmem:[%s3795_s9 + $0x3c] sm:$0xf] }
  0x3c   : > { %v1256_v12 = vrot.slane %v1254_v0, 5  ;;  %v1249_v18 = vsel %vm3834_vm4, %v1244_v2, %v1248_v42  ;;  %v287_v17 = vor.u32 %v286_v26, %v282_v51  ;;  %v1262_v20 = vrot.slane %v1260_v5, 5 }
  0x3d   : > { %v1270_v22 = vshll.u32 %v3955_v58, 16  ;;  %v2944_v24 = vcombine.low %v1239_v55, %v1249_v18  ;;  %v283_v28 = vsel %vm3834_vm4, %v278_v9, %v282_v51  ;;  %v1266_v34 = vrot.slane %v1264_v13, 4  ;;  %v3997_v18 = vld [vmem:[%s3795_s9 + $0x44] sm:$0x1] }
  0x3e   : > { %v1257_v30 = vor.u32 %v1256_v12, %v1253_v10  ;;  %v288_v40 = vrot.slane %v287_v17, 4  ;;  %v295_v42 = vshrl.u32 %v3960_v14, 16  ;;  %v298_v45 = vshll.u32 %v3960_v14, 16  ;;  %v2959_v17 = vld [vmem:[%s3795_s9 + $0x18] sm:$0xe] }
  0x3f   : > { %v1272_v43 = vrot.slane %v1270_v22, 5  ;;  %3343 = vmatprep.mubr.msk.bf16.mxu0 %vm416_vm3, %v2944_v24  ;;  %v1267_v47 = vor.u32 %v1266_v34, %v1262_v20  ;;  %v304_v48 = vshll.u32 %v3966_v23, 16  ;;  %v308_v49 = vshrl.u32 %v3966_v23, 16 }
  0x40   : > { %v1258_v46 = vrot.slane %v1257_v30, 4  ;;  %v293_v51 = vsel %vm3834_vm4, %v288_v40, %v292_v4  ;;  %v297_v53 = vrot.slane %v295_v42, 4  ;;  %v300_v54 = vrot.slane %v298_v45, 5  ;;  %v3994_v4 = vld [vmem:[%s3795_s9 + $0x40] sm:$0xf] }
  0x41   : > { %v314_v55 = vshll.u32 %v3971_v39, 16  ;;  %v2830_v59 = vcombine.low %v283_v28, %v293_v51  ;;  %v1268_v2 = vrot.slane %v1267_v47, 4  ;;  %v306_v26 = vrot.slane %v304_v48, 5  ;;  %v4008_v30 = vld [vmem:[%s3795_s9 + $0x48] sm:$0xf] }
  0x42   : > { %v1263_v0 = vsel %vm3834_vm4, %v1258_v46, %v1262_v20  ;;  %v301_v9 = vor.u32 %v300_v54, %v297_v53  ;;  %v310_v10 = vrot.slane %v308_v49, 4  ;;  %v2966_v13 = vrot.slane %v2958_v37, 9 }
  0x43   : > { %v316_v12 = vrot.slane %v314_v55, 5  ;;  %3272 = vmatmul.mubr.msk.bf16.gmra.mrb[4].mxu1 %vm416_vm3, %v2830_v59  ;;  %v1273_v20 = vsel %vm3834_vm4, %v1268_v2, %v1272_v43  ;;  %v1572_v22 = vrot.slane %v1570_v62, 4  ;;  %v319_v24 = vshrl.u32 %v3983_v56, 16  ;;  %v4028_v55 = vld [vmem:[%s3795_s9 + $0x50] sm:$0x1] }
  0x44   : > { %v322_v28 = vshll.u32 %v3983_v56, 16  ;;  %v2945_v34 = vcombine.low %v1263_v0, %v1273_v20  ;;  %v302_v40 = vrot.slane %v301_v9, 4  ;;  %v311_v42 = vor.u32 %v310_v10, %v306_v26 }
  0x45   : > { %v1571_v45 = vsel %vm3989_vm7, %v2966_v13, %v1570_v62  ;;  %v1574_v43 = vsel %vm3989_vm7, %v1572_v22, %v1573_v63  ;;  %v321_v46 = vrot.slane %v319_v24, 4  ;;  %v328_v48 = vshll.u32 %v3994_v4, 16  ;;  %v4024_v62 = vld [vmem:[%s3795_s9 + $0x4c] sm:$0xf] }
  0x46   : > { %v324_v47 = vrot.slane %v322_v28, 5  ;;  %3344 = vmatmul.mubr.msk.bf16.gmra.mrb[4].mxu0 %vm416_vm3, %v2945_v34  ;;  %v307_v49 = vsel %vm3834_vm4, %v302_v40, %v306_v26  ;;  %v312_v37 = vrot.slane %v311_v42, 4  ;;  %v2975_v15 = vcombine.low %v1571_v45, %v1574_v43  ;;  %v4046_v28 = vld [vmem:[%s3795_s9 + $0x54] sm:$0xf]  ;;  %v4057_v34 = vld [vmem:[%s4718_s1 + $0xe] sm:$0x3] }
  0x47   : > { %v332_v51 = vshrl.u32 %v3994_v4, 16  ;;  %v330_v53 = vrot.slane %v328_v48, 5  ;;  %v338_v63 = vshll.u32 %v3997_v18, 16  ;;  %v2967_v54 = vrot.slane %v2959_v17, 9 }
  0x48   : > { %v325_v16 = vor.u32 %v324_v47, %v321_v46  ;;  %v317_v59 = vsel %vm3834_vm4, %v312_v37, %v316_v12  ;;  %3357 = vmatprep.mubr.msk.bf16.mxu0 %vm416_vm3, %v2975_v15  ;;  %v1581_v2 = vsel %vm3989_vm7, %v3890_v35, %v1580_v33  ;;  %v343_v26 = vshrl.u32 %v4008_v30, 16  ;;  %v2960_v12 = vld [vmem:[%s3795_s9 + $0x24] sm:$0xe]  ;;  %v4062_v37 = vld [vmem:[%s3795_s9 + $0x58] sm:$0xf] }
  0x49   : > { %v334_v0 = vrot.slane %v332_v51, 4  ;;  %v2831_v9 = vcombine.low %v307_v49, %v317_v59  ;;  %v340_v13 = vrot.slane %v338_v63, 5  ;;  %v1578_v17 = vsel %vm3989_vm7, %v2967_v54, %v1577_v25  ;;  %v4071_v54 = vld [vmem:[%s3795_s9 + $0x5c] sm:$0x1] }
  0x4a   : > { %v326_v10 = vrot.slane %v325_v16, 4  ;;  %v2976_v22 = vcombine.low %v1578_v17, %v1581_v2  ;;  %v345_v24 = vrot.slane %v343_v26, 4  ;;  %v346_v1 = vshll.u32 %v4008_v30, 16 }
  0x4b   : > { %v335_v20 = vor.u32 %v334_v0, %v330_v53  ;;  %3275 = vmatprep.mubr.msk.bf16.mxu1 %vm416_vm3, %v2831_v9  ;;  %v352_v35 = vshll.u32 %v4024_v62, 16  ;;  %v356_v60 = vshrl.u32 %v4024_v62, 16  ;;  %v362_v25 = vshll.u32 %v4028_v55, 16 }
  0x4c   : > { %v331_v33 = vsel %vm3834_vm4, %v326_v10, %v330_v53  ;;  %v348_v42 = vrot.slane %v346_v1, 5  ;;  %v2968_v45 = vrot.slane %v2960_v12, 9  ;;  %v1584_v43 = vrot.slane %v3903_v52, 5  ;;  %v2961_v10 = vld [vmem:[%s3795_s9 + $0x30] sm:$0xe] }
  0x4d   : > { %v336_v40 = vrot.slane %v335_v20, 4  ;;  %v354_v46 = vrot.slane %v352_v35, 5  ;;  %v358_v47 = vrot.slane %v356_v60, 4  ;;  %v364_v48 = vrot.slane %v362_v25, 5 }
  0x4e   : > { %v1587_v49 = vrot.slane %v3915_v61, 5  ;;  %3358 = vmatmul.mubr.msk.bf16.vlgmr.msra.gmra.mrb[0].mxu0 %vm416_vm3, %v2976_v22  ;;  %v349_v51 = vor.u32 %v348_v42, %v345_v24  ;;  %v1585_v16 = vsel %vm3989_vm7, %v2968_v45, %v1584_v43  ;;  %v1586_v53 = vrot.slane %v1584_v43, 4  ;;  %v4092_v42 = vld [vmem:[%s3795_s9 + $0x40] sm:$0xf]  ;;  %v4095_v45 = vld [vmem:[%s3795_s9 + $0x44] sm:$0x1] }
  0x4f   : > { %v341_v15 = vsel %vm3834_vm4, %v336_v40, %v340_v13  ;;  %3374 = vmatpush3.bf16.msra.mxu0 %v3846_v41  ;;  %v359_v52 = vor.u32 %v358_v47, %v354_v46  ;;  %v367_v61 = vshrl.u32 %v4046_v28, 16  ;;  %v370_v59 = vshll.u32 %v4046_v28, 16 }
  0x50   : > { %v2832_v63 = vcombine.low %v331_v33, %v341_v15  ;;  %v350_v0 = vrot.slane %v349_v51, 4  ;;  %v1588_v2 = vsel %vm3989_vm7, %v1586_v53, %v1587_v49  ;;  %v376_v26 = vshll.u32 %v4062_v37, 16  ;;  %3565 = vmatprep.subr.msk.bf16.mxu0 %vm441_vm0, %v4057_v34  ;;  %v2962_v33 = vld [vmem:[%s3795_s9 + $0x3c] sm:$0xe] }
  0x51   : > { %v380_v9 = vshrl.u32 %v4062_v37, 16  ;;  %v360_v41 = vrot.slane %v359_v52, 4  ;;  %v2977_v13 = vcombine.low %v1585_v16, %v1588_v2  ;;  %v369_v17 = vrot.slane %v367_v61, 4  ;;  %v2963_v2 = vld [vmem:[%s3795_s9 + $0x48] sm:$0xe] }
  0x52   : > { %3276 = vmatmul.mubr.msk.bf16.gmra.mrb[8].mxu1 %vm416_vm3, %v2832_v63  ;;  %v372_v12 = vrot.slane %v370_v59, 5  ;;  %v355_v20 = vsel %vm3834_vm4, %v350_v0, %v354_v46  ;;  %v378_v22 = vrot.slane %v376_v26, 5  ;;  %v386_v1 = vshll.u32 %v4071_v54, 16  ;;  %v4110_v59 = vld [vmem:[%s3795_s9 + $0x4c] sm:$0xf] }
  0x53   : > { %v382_v24 = vrot.slane %v380_v9, 4  ;;  %v365_v35 = vsel %vm3834_vm4, %v360_v41, %v364_v48  ;;  %3361 = vmatprep.mubr.msk.bf16.mxu0 %vm416_vm3, %v2977_v13  ;;  %v2969_v25 = vrot.slane %v2961_v10, 9  ;;  %v1591_v40 = vrot.slane %v3945_v50, 5  ;;  %v4113_v0 = vld [vmem:[%s3795_s9 + $0x50] sm:$0x1] }
  0x54   : > { %v373_v60 = vor.u32 %v372_v12, %v369_v17  ;;  %v2833_v43 = vcombine.low %v355_v20, %v365_v35  ;;  %v388_v47 = vrot.slane %v386_v1, 5  ;;  %v1594_v49 = vrot.slane %v3955_v58, 5  ;;  %v4121_v17 = vld [vmem:[%s3795_s9 + $0x58] sm:$0xf]  ;;  %v4124_v12 = vld [vmem:[%s3795_s9 + $0x5c] sm:$0x1] }
  0x55   : > { %v383_v46 = vor.u32 %v382_v24, %v378_v22  ;;  %v1592_v48 = vsel %vm3989_vm7, %v2969_v25, %v1591_v40  ;;  %v1593_v51 = vrot.slane %v1591_v40, 4  ;;  %v2970_v16 = vrot.slane %v2962_v33, 9  ;;  %4732 = vst [vmem:[#allocation5_spill] sm:$0xff] %v4124_v12  ;;  %v4134_v35 = vld [vmem:[%s3795_s9 + $0x64] sm:$0xf] }
  0x56   : > { %v374_v15 = vrot.slane %v373_v60, 4  ;;  %3279 = vmatprep.mubr.msk.bf16.mxu1 %vm416_vm3, %v2833_v43  ;;  %v1598_v53 = vrot.slane %v4092_v42, 5  ;;  %v1601_v63 = vrot.slane %v4095_v45, 5  ;;  %v2843_v61 = vcombine.low %v3798_v6, %v3801_v7  ;;  %v2964_v6 = vld [vmem:[%s3795_s9 + $0x54] sm:$0xe]  ;;  %4733 = vst [vmem:[#allocation6_spill] sm:$0xff] %v4134_v35 }
  0x57   : > { %v384_v50 = vrot.slane %v383_v46, 4  ;;  %v1595_v58 = vsel %vm3989_vm7, %v1593_v51, %v1594_v49  ;;  %v1605_v24 = vrot.slane %v4110_v59, 5  ;;  %v1608_v1 = vrot.slane %v4113_v0, 5  ;;  %v4137_v60 = vld [vmem:[%s3795_s9 + $0x68] sm:$0x1] }
  0x58   : > { %v379_v52 = vsel %vm3834_vm4, %v374_v15, %v378_v22  ;;  %v2978_v9 = vcombine.low %v1592_v48, %v1595_v58  ;;  %v1599_v10 = vsel %vm3989_vm7, %v2970_v16, %v1598_v53  ;;  %v1600_v41 = vrot.slane %v1598_v53, 4  ;;  %4734 = vst [vmem:[#allocation7_spill] sm:$0xff] %v4137_v60 }
  0x59   : > { %v389_v26 = vsel %vm3834_vm4, %v384_v50, %v388_v47  ;;  %v2971_v22 = vrot.slane %v2963_v2, 9  ;;  %v1607_v40 = vrot.slane %v1605_v24, 4  ;;  %v2972_v43 = vrot.slane %v2964_v6, 9  ;;  %v2965_v47 = vld [vmem:[%s3795_s9 + $0x60] sm:$0xe] }
  0x5a   : > { %v2834_v13 = vcombine.low %v379_v52, %v389_v26  ;;  %3362 = vmatmul.mubr.msk.bf16.gmra.mrb[4].mxu0 %vm416_vm3, %v2978_v9  ;;  %v1602_v20 = vsel %vm3989_vm7, %v1600_v41, %v1601_v63  ;;  %v1612_v46 = vrot.slane %v4121_v17, 5  ;;  %v742_v49 = vrot.slane %v3839_v36, 5  ;;  %v708_v2 = vld [vmem:[%s3795_s9 + $0x18] sm:$0xe]  ;;  %v4169_v6 = vld [vmem:[%s4718_s1 + $0x6] sm:$0x3] }
  0x5b   : > { %v2979_v33 = vcombine.low %v1599_v10, %v1602_v20  ;;  %v1606_v25 = vsel %vm3989_vm7, %v2971_v22, %v1605_v24  ;;  %v1615_v15 = vrot.slane %v4124_v12, 5  ;;  %v1609_v48 = vsel %vm3989_vm7, %v1607_v40, %v1608_v1  ;;  %v710_v1 = vld [vmem:[%s3795_s9 + $0x30] sm:$0xe] }
  0x5c   : > { %3280 = vmatmul.mubr.msk.bf16.gmra.mrb[12].mxu1 %vm416_vm3, %v2834_v13  ;;  %v1613_v51 = vsel %vm3989_vm7, %v2972_v43, %v1612_v46  ;;  %v1614_v16 = vrot.slane %v1612_v46, 4  ;;  %v1619_v50 = vrot.slane %v4134_v35, 5  ;;  %v2844_v53 = vcombine.low %v3830_v31, %v3839_v36  ;;  %v709_v36 = vld [vmem:[%s3795_s9 + $0x24] sm:$0xe]  ;;  %v4443_v12 = vld [vmem:[%s3795_s9 + $0x70] sm:$0xf] }
  0x5d   : > { %3285 = vmatprep.mubr.msk.bf16.mxu1 %vm416_vm3, %v2843_v61  ;;  %3365 = vmatprep.mubr.msk.bf16.mxu0 %vm416_vm3, %v2979_v33  ;;  %v2980_v63 = vcombine.low %v1606_v25, %v1609_v48  ;;  %v2973_v52 = vrot.slane %v2965_v47, 9  ;;  %v1622_v58 = vrot.slane %v4137_v60, 5  ;;  %v707_v61 = vld [vmem:[%s3795_s9 + $0xc] sm:$0xe]  ;;  %v745_v26 = vrot.slane %v3849_v44, 5 }
  0x5e   : > { %v2845_v9 = vcombine.low %v3878_v21, %v3885_v27  ;;  %v1616_v10 = vsel %vm3989_vm7, %v1614_v16, %v1615_v15  ;;  %v1621_v41 = vrot.slane %v1619_v50, 4  ;;  %v840_v13 = vsel %vm441_vm0, %v3909_v57, 0  ;;  %v3614_v16 = vld [vmem:[%s3795_s9 + $0x18] sm:$0xff]   ;;  %v4415_v60 = vld [vmem:[%s3795_s9 + $0x64] sm:$0xf] }
  0x5f   : > { %v2981_v31 = vcombine.low %v1613_v51, %v1616_v10  ;;  %v2860_v44 = vrot.slane %v707_v61, 9  ;;  %v744_v20 = vrot.slane %v742_v49, 4  ;;  %v2861_v21 = vrot.slane %v708_v2, 9  ;;  %4735 = vst [vmem:[#allocation8_spill] sm:$0xff] %v4415_v60 }
  0x60   : > { %v1620_v22 = vsel %vm3989_vm7, %v2973_v52, %v1619_v50  ;;  %v1623_v57 = vsel %vm3989_vm7, %v1621_v41, %v1622_v58  ;;  %v749_v24 = vrot.slane %v3885_v27, 5  ;;  %v752_v40 = vrot.slane %v3893_v38, 5 }
  0x61   : > { %v4182_v33 = vsel %vm3989_vm7, %v2860_v44, %v742_v49  ;;  %v4186_v25 = vsel %vm3989_vm7, %v744_v20, %v745_v26  ;;  %v2862_v43 = vrot.slane %v709_v36, 9  ;;  %v2982_v49 = vcombine.low %v1620_v22, %v1623_v57  ;;  %v3024_v26 = vld [vmem:[%s3795_s9 + $0x18] sm:$0xf]  ;;  %v3616_v57 = vld [vmem:[%s3795_s9 + $0x24] sm:$0xff]  }
  0x62   : > { %3366 = vmatmul.mubr.msk.bf16.gmra.mrb[8].mxu0 %vm416_vm3, %v2980_v63  ;;  %v2869_v27 = vcombine.low %v4182_v33, %v4186_v25  ;;  %v4195_v46 = vsel %vm3989_vm7, %v2861_v21, %v749_v24  ;;  %v751_v47 = vrot.slane %v749_v24, 4  ;;  %v756_v15 = vrot.slane %v3925_v19, 5 }
  0x63   : > { %3369 = vmatprep.mubr.msk.bf16.mxu0 %vm416_vm3, %v2981_v31  ;;  %v759_v48 = vrot.slane %v3935_v29, 5  ;;  %v2863_v38 = vrot.slane %v710_v1, 9  ;;  %v2846_v51 = vcombine.low %v3922_v11, %v3925_v19  ;;  %v766_v63 = vrot.slane %v3971_v39, 5  ;;  %v711_v19 = vld [vmem:[%s3795_s9 + $0x3c] sm:$0xe] }
  0x64   : > { %3286 = vmatmul.mubr.msk.bf16.vlgmr.msra.gmra.mrb[0].mxu1 %vm416_vm3, %v2844_v53  ;;  %v4204_v50 = vsel %vm3989_vm7, %v751_v47, %v752_v40  ;;  %v763_v53 = vrot.slane %v3966_v23, 5  ;;  %v2847_v52 = vcombine.low %v3960_v14, %v3966_v23  ;;  %v4214_v58 = vsel %vm3989_vm7, %v2862_v43, %v756_v15  ;;  %v706_v14 = vld [vmem:[%s3795_s9] sm:$0xe]  ;;  %v4242_v31 = vld [vmem:[%s3795_s9 + $0x1c] sm:$0xf] }
  0x65   : > { %3302 = vmatpush3.bf16.msra.mxu1 %v840_v13  ;;  %3289 = vmatprep.mubr.msk.bf16.mxu1 %vm416_vm3, %v2845_v9  ;;  %v2870_v29 = vcombine.low %v4195_v46, %v4204_v50  ;;  %v758_v11 = vrot.slane %v756_v15, 4  ;;  %v735_v61 = vrot.slane %v3801_v7, 5  ;;  %v2864_v10 = vrot.slane %v711_v19, 9  ;;  %v712_v1 = vld [vmem:[%s3795_s9 + $0x48] sm:$0xe] }
  0x66   : > { %3560 = vmatprep.subr.msk.bf16.mxu1 %vm441_vm0, %v4169_v6  ;;  %v4220_v2 = vsel %vm3989_vm7, %v2863_v38, %v763_v53  ;;  %v765_v39 = vrot.slane %v763_v53, 4  ;;  %v738_v41 = vrot.slane %v3804_v8, 5  ;;  %v2859_v36 = vrot.slane %v706_v14, 9  ;;  %v4268_v38 = vld [vmem:[%s4718_s1 + $0x10] sm:$0x3] }
  0x67   : > { %v4226_v23 = vsel %vm3989_vm7, %v758_v11, %v759_v48  ;;  %v737_v44 = vrot.slane %v735_v61, 4  ;;  %v770_v20 = vrot.slane %v3994_v4, 5  ;;  %v773_v21 = vrot.slane %v3997_v18, 5  ;;  %v4289_v14 = vld [vmem:[%s3795_s9 + $0x28] sm:$0xf] }
  0x68   : > { %v4235_v9 = vsel %vm3989_vm7, %v765_v39, %v766_v63  ;;  %v2848_v22 = vcombine.low %v3983_v56, %v3994_v4  ;;  %v2014_v24 = vshrl.u32 %v3024_v26, 16  ;;  %v2017_v8 = vshll.u32 %v3024_v26, 16  ;;  %v3618_v4 = vld [vmem:[%s3795_s9 + $0x30] sm:$0xff]   ;;  %v4391_v46 = vld [vmem:[%s3795_s9 + $0x44] sm:$0x1] }
  0x69   : > { %v2023_v40 = vshll.u32 %v4242_v31, 16  ;;  %v2027_v43 = vshrl.u32 %v4242_v31, 16  ;;  %v4254_v47 = vsel %vm3989_vm7, %v2864_v10, %v770_v20  ;;  %v2256_v18 = vsel %vm441_vm0, %v4057_v34, 0  ;;  %v3042_v7 = vld [vmem:[%s3795_s9 + $0x60] sm:$0xf] }
  0x6a   : > { %3370 = vmatmul.mubr.msk.bf16.gmra.mrb[12].mxu0 %vm416_vm3, %v2982_v49  ;;  %v772_v49 = vrot.slane %v770_v20, 4  ;;  %v2849_v56 = vcombine.low %v4008_v30, %v4024_v62  ;;  %v736_v15 = vsel %vm3989_vm7, %v2859_v36, %v735_v61  ;;  %v739_v48 = vsel %vm3989_vm7, %v737_v44, %v738_v41  ;;  %v4276_v30 = vld [vmem:[%s3795_s9 + $0x20] sm:$0x1]  ;;  %v3027_v61 = vld [vmem:[%s3795_s9 + $0x24] sm:$0xf] }
  0x6b   : > { %3375 = vmatprep.mubr.msk.bf16.mxu0 %vm416_vm3, %v3614_v16  ;;  %v2865_v34 = vrot.slane %v712_v1, 9  ;;  %v2016_v16 = vrot.slane %v2014_v24, 4  ;;  %v2019_v53 = vrot.slane %v2017_v8, 5  ;;  %v4282_v11 = vrot.slane %v2023_v40, 5  ;;  %v713_v44 = vld [vmem:[%s3795_s9 + $0x54] sm:$0xe] }
  0x6c   : > { %3290 = vmatmul.mubr.msk.bf16.gmra.mrb[4].mxu1 %vm416_vm3, %v2846_v51  ;;  %v4272_v51 = vsel %vm3989_vm7, %v772_v49, %v773_v21  ;;  %v2029_v19 = vrot.slane %v2027_v43, 4  ;;  %v780_v39 = vrot.slane %v4028_v55, 5  ;;  %v2850_v10 = vcombine.low %v4046_v28, %v4062_v37  ;;  %v3030_v55 = vld [vmem:[%s3795_s9 + $0x30] sm:$0xf]  ;;  %v3620_v20 = vld [vmem:[%s3795_s9 + $0x3c] sm:$0xff]   ;;  %v3621_v1 = vld [vmem:[%s3795_s9 + $0x48] sm:$0xff]  }
  0x6d   : > { %3293 = vmatprep.mubr.msk.bf16.mxu1 %vm416_vm3, %v2847_v52  ;;  %v777_v52 = vrot.slane %v4024_v62, 5  ;;  %v2868_v41 = vcombine.low %v736_v15, %v739_v48  ;;  %v2033_v36 = vshll.u32 %v4276_v30, 16  ;;  %v2020_v21 = vor.u32 %v2019_v53, %v2016_v16  ;;  %v4308_v8 = vld [vmem:[%s3795_s9 + $0x34] sm:$0xf] }
  0x6e   : > { %v2030_v28 = vor.u32 %v2029_v19, %v4282_v11  ;;  %v2047_v40 = vshll.u32 %v4289_v14, 16  ;;  %v2051_v43 = vshrl.u32 %v4289_v14, 16  ;;  %v784_v15 = vrot.slane %v4062_v37, 5 }
  0x6f   : > { %v4293_v62 = vsel %vm3989_vm7, %v2865_v34, %v777_v52  ;;  %v779_v26 = vrot.slane %v777_v52, 4  ;;  %v2071_v48 = vshll.u32 %v4308_v8, 16  ;;  %v2075_v34 = vshrl.u32 %v4308_v8, 16 }
  0x70   : > { %v787_v16 = vrot.slane %v4071_v54, 5  ;;  %v2021_v53 = vrot.slane %v2020_v21, 4  ;;  %v2035_v52 = vrot.slane %v2033_v36, 5  ;;  %v2031_v37 = vrot.slane %v2030_v28, 4  ;;  %v4331_v36 = vld [vmem:[%s3795_s9 + $0x2c] sm:$0x1] }
  0x71   : > { %v4305_v24 = vsel %vm3989_vm7, %v779_v26, %v780_v39  ;;  %v4327_v26 = vrot.slane %v2047_v40, 5  ;;  %v4338_v21 = vld [vmem:[%s3795_s9 + $0x38] sm:$0x1]  ;;  %v1039_v28 = vsel %vm441_vm0, %v4169_v6, 0 }
  0x72   : > { %3376 = vmatmul.mubr.msk.bf16.vlgmr.msra.gmra.mrb[0].mxu0 %vm416_vm3, %v3616_v57  ;;  %v2041_v57 = vshll.u32 %v3027_v61, 16  ;;  %v3622_v40 = vld [vmem:[%s3795_s9 + $0x54] sm:$0xff]  }
  0x73   : > { %3392 = vmatpush3.bf16.msra.mxu0 %v2256_v18  ;;  %3379 = vmatprep.mubr.msk.bf16.mxu0 %vm416_vm3, %v3618_v4  ;;  %v2062_v18 = vshrl.u32 %v3030_v55, 16  ;;  %v2866_v4 = vrot.slane %v713_v44, 9 }
  0x74   : > { %3294 = vmatmul.mubr.msk.bf16.gmra.mrb[8].mxu1 %vm416_vm3, %v2848_v22  ;;  %3566 = vmatprep.subr.msk.bf16.mxu0 %vm441_vm0, %v4268_v38  ;;  %v2038_v22 = vshrl.u32 %v3027_v61, 16  ;;  %v786_v61 = vrot.slane %v784_v15, 4  ;;  %v2043_v54 = vrot.slane %v2041_v57, 5  ;;  %v2077_v57 = vrot.slane %v2075_v34, 4  ;;  %v3036_v34 = vld [vmem:[%s3795_s9 + $0x48] sm:$0xf] }
  0x75   : > { %3297 = vmatprep.mubr.msk.bf16.mxu1 %vm416_vm3, %v2849_v56  ;;  %v2065_v56 = vshll.u32 %v3030_v55, 16  ;;  %v4323_v19 = vsel %vm3989_vm7, %v2866_v4, %v784_v15  ;;  %v2053_v55 = vrot.slane %v2051_v43, 4  ;;  %v2064_v44 = vrot.slane %v2062_v18, 4  ;;  %v4349_v43 = vld [vmem:[%s3795_s9 + $0x40] sm:$0xf] }
  0x76   : > { %v2040_v39 = vrot.slane %v2038_v22, 4  ;;  %v4340_v22 = vrot.slane %v2071_v48, 5  ;;  %v3623_v18 = vld [vmem:[%s3795_s9 + $0x60] sm:$0xff]   ;;  %v2036_v4 = vsel %vm3834_vm4, %v2031_v37, %v2035_v52  ;;  %v2057_v48 = vshll.u32 %v4331_v36, 16 }
  0x77   : > { %v2110_v52 = vshrl.u32 %v3036_v34, 16  ;;  %v2113_v37 = vshll.u32 %v3036_v34, 16 }
  0x78   : > { %v2044_v15 = vor.u32 %v2043_v54, %v2040_v39  ;;  %v2078_v63 = vor.u32 %v2077_v57, %v4340_v22  ;;  %v3039_v57 = vld [vmem:[%s3795_s9 + $0x54] sm:$0xf] }
  0x79   : > { %v2112_v50 = vrot.slane %v2110_v52, 4  ;;  %v2137_v34 = vshll.u32 %v3039_v57, 16 }
  0x7a   : > { %3380 = vmatmul.mubr.msk.bf16.gmra.mrb[4].mxu0 %vm416_vm3, %v3620_v20  ;;  %v2067_v20 = vrot.slane %v2065_v56, 5  ;;  %v2026_v56 = vsel %vm3834_vm4, %v2021_v53, %v4282_v11  ;;  %v2095_v11 = vshll.u32 %v4349_v43, 16  ;;  %v2099_v53 = vshrl.u32 %v4349_v43, 16 }
  0x7b   : > { %3383 = vmatprep.mubr.msk.bf16.mxu0 %vm416_vm3, %v3621_v1  ;;  %v2081_v1 = vshll.u32 %v4338_v21, 16  ;;  %v3049_v54 = vcombine.low %v2026_v56, %v2036_v4  ;;  %v2079_v56 = vrot.slane %v2078_v63, 4  ;;  %v4396_v63 = vld [vmem:[%s3795_s9 + $0x50] sm:$0x1] }
  0x7c   : > { %3298 = vmatmul.mubr.msk.bf16.gmra.mrb[12].mxu1 %vm416_vm3, %v2850_v10  ;;  %v4335_v10 = vsel %vm3989_vm7, %v786_v61, %v787_v16  ;;  %v4360_v16 = vld [vmem:[%s3795_s9 + $0x4c] sm:$0xf]  ;;  %v2054_v61 = vor.u32 %v2053_v55, %v4327_v26  ;;  %v2068_v6 = vor.u32 %v2067_v20, %v2064_v44  ;;  %v2045_v55 = vrot.slane %v2044_v15, 4 }
  0x7d   : > { %3303 = vmatprep.mubr.msk.bf16.mxu1 %vm416_vm3, %v2868_v41  ;;  %v3033_v41 = vld [vmem:[%s3795_s9 + $0x3c] sm:$0xf]  ;;  %v2119_v39 = vshll.u32 %v4360_v16, 16  ;;  %v2059_v44 = vrot.slane %v2057_v48, 5  ;;  %v2123_v20 = vshrl.u32 %v4360_v16, 16  ;;  %v2083_v33 = vrot.slane %v2081_v1, 5 }
  0x7e   : > { %v2086_v49 = vshrl.u32 %v3033_v41, 16  ;;  %v2089_v13 = vshll.u32 %v3033_v41, 16  ;;  %v2055_v41 = vrot.slane %v2054_v61, 4  ;;  %v4384_v15 = vrot.slane %v2095_v11, 5 }
  0x7f   : > { %v2101_v48 = vrot.slane %v2099_v53, 4  ;;  %v2134_v1 = vshrl.u32 %v3039_v57, 16  ;;  %v1308_v11 = vshll.u32 %v4110_v59, 16  ;;  %v2050_v53 = vsel %vm3834_vm4, %v2045_v55, %v4327_v26 }
  0x80   : > { %v2088_v25 = vrot.slane %v2086_v49, 4  ;;  %v2091_v4 = vrot.slane %v2089_v13, 5  ;;  %v4393_v49 = vrot.slane %v2119_v39, 5  ;;  %v2125_v13 = vrot.slane %v2123_v20, 4 }
  0x81   : > { %v2060_v52 = vsel %vm3834_vm4, %v2055_v41, %v2059_v44  ;;  %v2102_v57 = vor.u32 %v2101_v48, %v4384_v15  ;;  %v2084_v26 = vsel %vm3834_vm4, %v2079_v56, %v2083_v33  ;;  %v2136_v44 = vrot.slane %v2134_v1, 4  ;;  %v4434_v56 = vld [vmem:[%s3795_s9 + $0x5c] sm:$0x1] }
  0x82   : > { %3384 = vmatmul.mubr.msk.bf16.gmra.mrb[8].mxu0 %vm416_vm3, %v3622_v40  ;;  %v2069_v40 = vrot.slane %v2068_v6, 4  ;;  %v2092_v20 = vor.u32 %v2091_v4, %v2088_v25  ;;  %v2126_v41 = vor.u32 %v2125_v13, %v4393_v49  ;;  %v4737_v33 = vcombine.low %v4220_v2, %v4235_v9 }
  0x83   : > { %3387 = vmatprep.mubr.msk.bf16.mxu0 %vm416_vm3, %v3623_v18  ;;  %v3624_v18 = vld [vmem:[%s3795_s9 + $0x6c] sm:$0xff]   ;;  %v2158_v4 = vshrl.u32 %v3042_v7, 16  ;;  %v1312_v48 = vshrl.u32 %v4110_v59, 16  ;;  %v3050_v13 = vcombine.low %v2050_v53, %v2060_v52 }
  0x84   : > { %3304 = vmatmul.mubr.msk.bf16.vlgmr.msra.gmra.mrb[0].mxu1 %vm416_vm3, %v2869_v27  ;;  %v4381_v27 = vld [vmem:[%s3795_s9 + $0x58] sm:$0xf]  ;;  %v2074_v39 = vsel %vm3834_vm4, %v2069_v40, %v4340_v22  ;;  %v4736_v22 = vcombine.low %v4214_v58, %v4226_v23  ;;  %v2139_v40 = vrot.slane %v2137_v34, 5  ;;  %v2161_v58 = vshll.u32 %v3042_v7, 16 }
  0x85   : > { %3320 = vmatpush3.bf16.msra.mxu1 %v1039_v28  ;;  %3307 = vmatprep.mubr.msk.bf16.mxu1 %vm416_vm3, %v2870_v29  ;;  %v3633_v28 = vld [vmem:[%s4718_s1 + $0x8] sm:$0x3]  ;;  %v2115_v29 = vrot.slane %v2113_v37, 5  ;;  %v2143_v61 = vshll.u32 %v4381_v27, 16  ;;  %v2147_v6 = vshrl.u32 %v4381_v27, 16  ;;  %v2510_v37 = vsel %vm441_vm0, %v4268_v38, 0 }
  0x86   : > { %3562 = vmatprep.subr.msk.bf16.mxu1 %vm441_vm0, %v3633_v28  ;;  %v2105_v28 = vshll.u32 %v4391_v46, 16  ;;  %v2129_v38 = vshll.u32 %v4396_v63, 16  ;;  %v2167_v23 = vshll.u32 %v4415_v60, 16  ;;  %v3051_v34 = vcombine.low %v2074_v39, %v2084_v26 }
  0x87   : > { %v2116_v55 = vor.u32 %v2115_v29, %v2112_v50  ;;  %v4427_v25 = vrot.slane %v2143_v61, 5  ;;  %v2093_v50 = vrot.slane %v2092_v20, 4  ;;  %v2103_v29 = vrot.slane %v2102_v57, 4 }
  0x88   : > { %v2107_v1 = vrot.slane %v2105_v28, 5  ;;  %v2131_v9 = vrot.slane %v2129_v38, 5  ;;  %v2127_v61 = vrot.slane %v2126_v41, 4  ;;  %v2153_v7 = vshll.u32 %v4434_v56, 16  ;;  %v4455_v28 = vld [vmem:[%s3795_s9 + $0x68] sm:$0x1] }
  0x89   : > { %v2117_v2 = vrot.slane %v2116_v55, 4  ;;  %v2160_v35 = vrot.slane %v2158_v4, 4  ;;  %v4445_v59 = vrot.slane %v2167_v23, 5  ;;  %v4447_v57 = vrot.slane %v1308_v11, 5 }
  0x8a   : > { %3388 = vmatmul.mubr.msk.bf16.gmra.mrb[12].mxu0 %vm416_vm3, %v3624_v18  ;;  %v2149_v18 = vrot.slane %v2147_v6, 4  ;;  %v2140_v6 = vor.u32 %v2139_v40, %v2136_v44  ;;  %v1314_v53 = vrot.slane %v1312_v48, 4  ;;  %v2098_v52 = vsel %vm3834_vm4, %v2093_v50, %v4384_v15 }
  0x8b   : > { %3393 = vmatprep.mubr.msk.bf16.mxu0 %vm416_vm3, %v3049_v54  ;;  %v2171_v54 = vshrl.u32 %v4415_v60, 16  ;;  %v2163_v60 = vrot.slane %v2161_v58, 5  ;;  %v2108_v39 = vsel %vm3834_vm4, %v2103_v29, %v2107_v1  ;;  %v2191_v38 = vshll.u32 %v4443_v12, 16  ;;  %v3625_v1 = vld [vmem:[%s3795_s9 + $0xc] sm:$0xff]  }
  0x8c   : > { %3308 = vmatmul.mubr.msk.bf16.gmra.mrb[4].mxu1 %vm416_vm3, %v4736_v22  ;;  %v2150_v22 = vor.u32 %v2149_v18, %v4427_v25  ;;  %v2195_v44 = vshrl.u32 %v4443_v12, 16  ;;  %v4738_v11 = vcombine.low %v4254_v47, %v4272_v51  ;;  %v2122_v15 = vsel %vm3834_vm4, %v2117_v2, %v4393_v49 }
  0x8d   : > { %3311 = vmatprep.mubr.msk.bf16.mxu1 %vm416_vm3, %v4737_v33  ;;  %v3045_v33 = vld [vmem:[%s3795_s9 + $0x6c] sm:$0xf]  ;;  %v2173_v20 = vrot.slane %v2171_v54, 4  ;;  %v2132_v41 = vsel %vm3834_vm4, %v2127_v61, %v2131_v9  ;;  %v2141_v40 = vrot.slane %v2140_v6, 4  ;;  %v2155_v18 = vrot.slane %v2153_v7, 5 }
  0x8e   : > { %v2182_v26 = vshrl.u32 %v3045_v33, 16  ;;  %v2185_v55 = vshll.u32 %v3045_v33, 16  ;;  %v4739_v4 = vcombine.low %v4293_v62, %v4305_v24  ;;  %v2151_v47 = vrot.slane %v2150_v22, 4  ;;  %v2932_v22 = vld [vmem:[%s3795_s9 + $0x48] sm:$0xf] }
  0x8f   : > { %v2164_v51 = vor.u32 %v2163_v60, %v2160_v35  ;;  %v2177_v49 = vshll.u32 %v4455_v28, 16  ;;  %v1315_v58 = vor.u32 %v1314_v53, %v4447_v57  ;;  %v1318_v23 = vshll.u32 %v4113_v0, 16  ;;  %v4484_v60 = vld [vmem:[%s3795_s9 + $0x74] sm:$0x1] }
  0x90   : > { %v3052_v54 = vcombine.low %v2098_v52, %v2108_v39  ;;  %v2184_v48 = vrot.slane %v2182_v26, 4  ;;  %v2187_v62 = vrot.slane %v2185_v55, 5  ;;  %v4478_v24 = vrot.slane %v2191_v38, 5 }
  0x91   : > { %v2197_v50 = vrot.slane %v2195_v44, 4  ;;  %v3053_v29 = vcombine.low %v2122_v15, %v2132_v41  ;;  %v2146_v35 = vsel %vm3834_vm4, %v2141_v40, %v4427_v25  ;;  %v2165_v0 = vrot.slane %v2164_v51, 4  ;;  %v3627_v51 = vld [vmem:[%s3795_s9 + $0x24] sm:$0xff]  }
  0x92   : > { %3394 = vmatmul.mubr.msk.bf16.vlgmr.msra.gmra.mrb[0].mxu0 %vm416_vm3, %v3050_v13  ;;  %v2156_v13 = vsel %vm3834_vm4, %v2151_v47, %v2155_v18  ;;  %v2179_v2 = vrot.slane %v2177_v49, 5  ;;  %v1316_v9 = vrot.slane %v1315_v58, 4  ;;  %v1320_v61 = vrot.slane %v1318_v23, 5 }
  0x93   : > { %3410 = vmatpush3.bf16.msra.mxu0 %v2510_v37  ;;  %3397 = vmatprep.mubr.msk.bf16.mxu0 %vm416_vm3, %v3051_v34  ;;  %v2174_v37 = vor.u32 %v2173_v20, %v4445_v59  ;;  %v2405_v6 = vrot.slane %v4242_v31, 5  ;;  %v2188_v7 = vor.u32 %v2187_v62, %v2184_v48  ;;  %v2198_v33 = vor.u32 %v2197_v50, %v4478_v24  ;;  %v3065_v20 = vld [vmem:[%s3795_s9 + $0x18] sm:$0xe]  ;;  %v3067_v62 = vld [vmem:[%s3795_s9 + $0x30] sm:$0xe] }
  0x94   : > { %3312 = vmatmul.mubr.msk.bf16.gmra.mrb[8].mxu1 %vm416_vm3, %v4738_v11  ;;  %v2201_v25 = vshll.u32 %v4484_v60, 16  ;;  %v4740_v53 = vcombine.low %v4323_v19, %v4335_v10  ;;  %v3054_v52 = vcombine.low %v2146_v35, %v2156_v13  ;;  %v2170_v31 = vsel %vm3834_vm4, %v2165_v0, %v4445_v59  ;;  %v3626_v59 = vld [vmem:[%s3795_s9 + $0x18] sm:$0xff]  }
  0x95   : > { %3315 = vmatprep.mubr.msk.bf16.mxu1 %vm416_vm3, %v4739_v4  ;;  %v2175_v34 = vrot.slane %v2174_v37, 4  ;;  %v1299_v26 = vshrl.u32 %v2932_v22, 16  ;;  %v1302_v55 = vshll.u32 %v2932_v22, 16  ;;  %v3073_v19 = vrot.slane %v3065_v20, 9  ;;  %v2929_v4 = vld [vmem:[%s3795_s9 + $0x3c] sm:$0xf] }
  0x96   : > { %v2407_v10 = vrot.slane %v2405_v6, 4  ;;  %v2408_v38 = vrot.slane %v4276_v30, 5  ;;  %v1321_v44 = vsel %vm3834_vm4, %v1316_v9, %v1320_v61  ;;  %v2189_v11 = vrot.slane %v2188_v7, 4  ;;  %v3066_v30 = vld [vmem:[%s3795_s9 + $0x24] sm:$0xe]  ;;  %v3628_v22 = vld [vmem:[%s3795_s9 + $0x30] sm:$0xff]  }
  0x97   : > { %v2180_v39 = vsel %vm3834_vm4, %v2175_v34, %v2179_v2  ;;  %v2199_v15 = vrot.slane %v2198_v33, 4  ;;  %v2203_v41 = vrot.slane %v2201_v25, 5  ;;  %v1301_v40 = vrot.slane %v1299_v26, 4  ;;  %v3629_v20 = vld [vmem:[%s3795_s9 + $0x3c] sm:$0xff]   ;;  %v2935_v26 = vld [vmem:[%s3795_s9 + $0x54] sm:$0xf] }
  0x98   : > { %v3055_v18 = vcombine.low %v2170_v31, %v2180_v39  ;;  %v1304_v47 = vrot.slane %v1302_v55, 5  ;;  %v2406_v37 = vsel %vm3989_vm7, %v3073_v19, %v2405_v6  ;;  %v2409_v49 = vsel %vm3989_vm7, %v2407_v10, %v2408_v38  ;;  %v3069_v38 = vld [vmem:[%s3795_s9 + $0x48] sm:$0xe] }
  0x99   : > { %v2412_v58 = vrot.slane %v4289_v14, 5  ;;  %v2204_v48 = vsel %vm3834_vm4, %v2199_v15, %v2203_v41  ;;  %v2419_v50 = vrot.slane %v4308_v8, 5  ;;  %v1278_v35 = vshll.u32 %v2929_v4, 16 }
  0x9a   : > { %3398 = vmatmul.mubr.msk.bf16.gmra.mrb[4].mxu0 %vm416_vm3, %v3052_v54  ;;  %v1305_v23 = vor.u32 %v1304_v47, %v1301_v40  ;;  %v2194_v54 = vsel %vm3834_vm4, %v2189_v11, %v4478_v24  ;;  %v1284_v14 = vshll.u32 %v4092_v42, 16  ;;  %v3074_v24 = vrot.slane %v3066_v30, 9 }
  0x9b   : > { %3401 = vmatprep.mubr.msk.bf16.mxu0 %vm416_vm3, %v3053_v29  ;;  %v1275_v29 = vshrl.u32 %v2929_v4, 16  ;;  %v2415_v8 = vrot.slane %v4331_v36, 5  ;;  %v3082_v0 = vcombine.low %v2406_v37, %v2409_v49  ;;  %v2414_v34 = vrot.slane %v2412_v58, 4  ;;  %v3630_v37 = vld [vmem:[%s3795_s9 + $0x48] sm:$0xff]  }
  0x9c   : > { %3316 = vmatmul.mubr.msk.bf16.gmra.mrb[12].mxu1 %vm416_vm3, %v4740_v53  ;;  %v1306_v13 = vrot.slane %v1305_v23, 4  ;;  %v3075_v2 = vrot.slane %v3067_v62, 9  ;;  %v3056_v61 = vcombine.low %v2194_v54, %v2204_v48  ;;  %v2421_v6 = vrot.slane %v2419_v50, 4  ;;  %v3631_v23 = vld [vmem:[%s3795_s9 + $0x54] sm:$0xff]  }
  0x9d   : > { %3321 = vmatprep.mubr.msk.bf16.mxu1 %vm416_vm3, %v3625_v1  ;;  %v1288_v1 = vshrl.u32 %v4092_v42, 16  ;;  %v2422_v42 = vrot.slane %v4338_v21, 5  ;;  %v1277_v7 = vrot.slane %v1275_v29, 4  ;;  %v1280_v33 = vrot.slane %v1278_v35, 5 }
  0x9e   : > { %v1311_v9 = vsel %vm3834_vm4, %v1306_v13, %v4447_v57  ;;  %v4540_v25 = vrot.slane %v1284_v14, 5  ;;  %v2413_v53 = vsel %vm3989_vm7, %v3074_v24, %v2412_v58  ;;  %v2416_v57 = vsel %vm3989_vm7, %v2414_v34, %v2415_v8  ;;  %v3070_v24 = vld [vmem:[%s3795_s9 + $0x54] sm:$0xe]  ;;  %v4741_v8 = vld [vmem:[#allocation8_spill] sm:$0xff] }
  0x9f   : > { %v1290_v36 = vrot.slane %v1288_v1, 4  ;;  %v2420_v21 = vsel %vm3989_vm7, %v3075_v2, %v2419_v50  ;;  %v2426_v31 = vrot.slane %v4349_v43, 5  ;;  %v1294_v39 = vshll.u32 %v4095_v45, 16  ;;  %v2938_v50 = vld [vmem:[%s3795_s9 + $0x60] sm:$0xf] }
  0xa0   : > { %v2423_v55 = vsel %vm3989_vm7, %v2421_v6, %v2422_v42  ;;  %v1281_v19 = vor.u32 %v1280_v33, %v1277_v7  ;;  %v3083_v43 = vcombine.low %v2413_v53, %v2416_v57  ;;  %v2429_v11 = vrot.slane %v4391_v46, 5  ;;  %v4743_v33 = vld [vmem:[#allocation5_spill] sm:$0xff] }
  0xa1   : > { %v1291_v10 = vor.u32 %v1290_v36, %v4540_v25  ;;  %v1323_v15 = vshrl.u32 %v2935_v26, 16  ;;  %v1326_v41 = vshll.u32 %v2935_v26, 16  ;;  %v1332_v40 = vshll.u32 %v4121_v17, 16 }
  0xa2   : > { %3402 = vmatmul.mubr.msk.bf16.gmra.mrb[8].mxu0 %vm416_vm3, %v3054_v52  ;;  %v3068_v52 = vld [vmem:[%s3795_s9 + $0x3c] sm:$0xe]  ;;  %v2428_v4 = vrot.slane %v2426_v31, 4  ;;  %v1296_v47 = vrot.slane %v1294_v39, 5  ;;  %v2436_v58 = vrot.slane %v4396_v63, 5  ;;  %v2440_v63 = vrot.slane %v4381_v27, 5 }
  0xa3   : > { %3405 = vmatprep.mubr.msk.bf16.mxu0 %vm416_vm3, %v3055_v18  ;;  %v3076_v45 = vrot.slane %v3068_v52, 9  ;;  %v3084_v18 = vcombine.low %v2420_v21, %v2423_v55  ;;  %v1292_v49 = vrot.slane %v1291_v10, 4  ;;  %v1325_v46 = vrot.slane %v1323_v15, 4  ;;  %v3071_v27 = vld [vmem:[%s3795_s9 + $0x60] sm:$0xe] }
  0xa4   : > { %3322 = vmatmul.mubr.msk.bf16.vlgmr.msra.gmra.mrb[0].mxu1 %vm416_vm3, %v3626_v59  ;;  %v1336_v59 = vshrl.u32 %v4121_v17, 16  ;;  %v1328_v54 = vrot.slane %v1326_v41, 5  ;;  %v1334_v48 = vrot.slane %v1332_v40, 5  ;;  %v2430_v29 = vsel %vm3989_vm7, %v2428_v4, %v2429_v11  ;;  %v3632_v52 = vld [vmem:[%s3795_s9 + $0x60] sm:$0xff]  }
  0xa5   : > { %3428 = vmatpush3.bf16.msra.mxu1 %v3780_v3  ;;  %3325 = vmatprep.mubr.msk.bf16.mxu1 %vm416_vm3, %v3627_v51  ;;  %v4537_v3 = vcombine.low %v1311_v9, %v1321_v44  ;;  %v2433_v44 = vrot.slane %v4360_v16, 5  ;;  %v3077_v51 = vrot.slane %v3069_v38, 9  ;;  %v1282_v16 = vrot.slane %v1281_v19, 4  ;;  %v4742_v9 = vld [vmem:[#allocation6_spill] sm:$0xff] }
  0xa6   : > { %v1338_v62 = vrot.slane %v1336_v59, 4  ;;  %v2427_v17 = vsel %vm3989_vm7, %v3076_v45, %v2426_v31  ;;  %v1297_v1 = vsel %vm3834_vm4, %v1292_v49, %v1296_v47  ;;  %v1347_v34 = vshrl.u32 %v2938_v50, 16  ;;  %v3072_v47 = vld [vmem:[%s3795_s9 + $0x6c] sm:$0xe]  ;;  %s3136_s9 = sshll.u32 %s3742_s16, 10  ;;  %s4676_s16 = scalar_lea.sflag [#allocation3], %s161_s6 }
  0xa7   : > { %v2435_v30 = vrot.slane %v2433_v44, 4  ;;  %v2434_v35 = vsel %vm3989_vm7, %v3077_v51, %v2433_v44  ;;  %v1287_v14 = vsel %vm3834_vm4, %v1282_v16, %v4540_v25  ;;  %v1350_v2 = vshll.u32 %v2938_v50, 16  ;;  %s4668_s19 = scalar_lea.hbm %s4720_s3, %s3136_s9 }
  0xa8   : > { %v1360_v6 = vshrl.u32 %v4742_v9, 16  ;;  %v3085_v42 = vcombine.low %v2427_v17, %v2430_v29  ;;  %v1339_v7 = vor.u32 %v1338_v62, %v1334_v48  ;;  %v1342_v25 = vshll.u32 %v4743_v33, 16 }
  0xa9   : > { %v2437_v13 = vsel %vm3989_vm7, %v2435_v30, %v2436_v58  ;;  %v2442_v53 = vrot.slane %v2440_v63, 4  ;;  %v2443_v57 = vrot.slane %v4434_v56, 5  ;;  %v2946_v21 = vcombine.low %v1287_v14, %v1297_v1 }
  0xaa   : > { %3406 = vmatmul.mubr.msk.bf16.gmra.mrb[12].mxu0 %vm416_vm3, %v3056_v61  ;;  %v1356_v61 = vshll.u32 %v4742_v9, 16  ;;  %v3086_v36 = vcombine.low %v2434_v35, %v2437_v13  ;;  %v3079_v31 = vrot.slane %v3071_v27, 9  ;;  %v2450_v26 = vrot.slane %v4455_v28, 5 }
  0xab   : > { %3411 = vmatprep.mubr.msk.bf16.mxu0 %vm416_vm3, %v3082_v0  ;;  %v2447_v0 = vrot.slane %v4741_v8, 5  ;;  %v1349_v55 = vrot.slane %v1347_v34, 4  ;;  %v1352_v19 = vrot.slane %v1350_v2, 5  ;;  %v1362_v38 = vrot.slane %v1360_v6, 4 }
  0xac   : > { %3326 = vmatmul.mubr.msk.bf16.gmra.mrb[4].mxu1 %vm416_vm3, %v3628_v22  ;;  %v1329_v22 = vor.u32 %v1328_v54, %v1325_v46  ;;  %v1358_v10 = vrot.slane %v1356_v61, 5  ;;  %v1344_v45 = vrot.slane %v1342_v25, 5  ;;  %v2444_v28 = vsel %vm3989_vm7, %v2442_v53, %v2443_v57 }
  0xad   : > { %3329 = vmatprep.mubr.msk.bf16.mxu1 %vm416_vm3, %v3629_v20  ;;  %v3078_v20 = vrot.slane %v3070_v24, 9  ;;  %v2449_v39 = vrot.slane %v2447_v0, 4  ;;  %v2448_v11 = vsel %vm3989_vm7, %v3079_v31, %v2447_v0  ;;  %v2454_v15 = vrot.slane %v4443_v12, 5 }
  0xae   : > { %v1330_v44 = vrot.slane %v1329_v22, 4  ;;  %v1353_v40 = vor.u32 %v1352_v19, %v1349_v55  ;;  %v1363_v59 = vor.u32 %v1362_v38, %v1358_v10  ;;  %v3080_v30 = vrot.slane %v3072_v47, 9 }
  0xaf   : > { %v2441_v56 = vsel %vm3989_vm7, %v3078_v20, %v2440_v63  ;;  %v2451_v41 = vsel %vm3989_vm7, %v2449_v39, %v2450_v26  ;;  %v2456_v12 = vrot.slane %v2454_v15, 4  ;;  %v2457_v58 = vrot.slane %v4484_v60, 5 }
  0xb0   : > { %v1335_v51 = vsel %vm3834_vm4, %v1330_v44, %v1334_v48  ;;  %v3087_v16 = vcombine.low %v2441_v56, %v2444_v28  ;;  %v3088_v49 = vcombine.low %v2448_v11, %v2451_v41  ;;  %v1354_v46 = vrot.slane %v1353_v40, 4 }
  0xb1   : > { %v1364_v54 = vrot.slane %v1363_v59, 4  ;;  %v2455_v48 = vsel %vm3989_vm7, %v3080_v30, %v2454_v15  ;;  %v2458_v50 = vsel %vm3989_vm7, %v2456_v12, %v2457_v58 }
  0xb2   : > { %3412 = vmatmul.mubr.msk.bf16.vlgmr.msra.gmra.mrb[0].mxu0 %vm416_vm3, %v3083_v43  ;;  %v1340_v43 = vrot.slane %v1339_v7, 4  ;;  %v1359_v60 = vsel %vm3834_vm4, %v1354_v46, %v1358_v10  ;;  %v3089_v29 = vcombine.low %v2455_v48, %v2458_v50 }
  0xb3   : > { %3415 = vmatprep.mubr.msk.bf16.mxu0 %vm416_vm3, %v3084_v18  ;;  %v4744_v18 = vld [vmem:[#allocation7_spill] sm:$0xff] }
  0xb4   : > { %3330 = vmatmul.mubr.msk.bf16.gmra.mrb[8].mxu1 %vm416_vm3, %v3630_v37  ;;  %v1366_v4 = vshll.u32 %v4744_v18, 16  ;;  %v1345_v37 = vsel %vm3834_vm4, %v1340_v43, %v1344_v45 }
  0xb5   : > { %3333 = vmatprep.mubr.msk.bf16.mxu1 %vm416_vm3, %v3631_v23  ;;  %v2948_v23 = vcombine.low %v1335_v51, %v1345_v37 }
  0xb6   : > { %v1368_v62 = vrot.slane %v1366_v4, 5 }
  0xb8   : > { %v1369_v17 = vsel %vm3834_vm4, %v1364_v54, %v1368_v62 }
  0xb9   : > { %v2949_v35 = vcombine.low %v1359_v60, %v1369_v17 }
  0xba   : > { %3416 = vmatmul.mubr.msk.bf16.gmra.mrb[4].mxu0 %vm416_vm3, %v3085_v42 }
  0xbb   : > { %3419 = vmatprep.mubr.msk.bf16.mxu0 %vm416_vm3, %v3086_v36 }
  0xbc   : > { %3334 = vmatmul.mubr.msk.bf16.gmra.mrb[12].mxu1 %vm416_vm3, %v3632_v52 }
  0xbd   : > { %3347 = vmatprep.mubr.msk.bf16.mxu1 %vm416_vm3, %v2946_v21 }
  0xc2   : > { %3420 = vmatmul.mubr.msk.bf16.gmra.mrb[8].mxu0 %vm416_vm3, %v3087_v16 }
  0xc3   : > { %3423 = vmatprep.mubr.msk.bf16.mxu0 %vm416_vm3, %v3088_v49 }
  0xc4   : > { %3348 = vmatmul.mubr.msk.bf16.vlgmr.msra.gmra.mrb[8].mxu1 %vm416_vm3, %v4537_v3 }
  0xc5   : > { %3351 = vmatprep.mubr.msk.bf16.mxu1 %vm416_vm3, %v2948_v23 }
  0xca   : > { %3424 = vmatmul.mubr.msk.bf16.gmra.mrb[12].mxu0 %vm416_vm3, %v3089_v29 }
  0xcc   : > { %3352 = vmatmul.mubr.msk.bf16.gmra.mrb[12].mxu1 %vm416_vm3, %v2949_v35 }
 0x177   : > { %v3323_v3 = vpop.f32.mrb[0].mxu1 }
 0x178   : > { %v1075_v63 = vpop.f32.mrb[1].mxu1 }
 0x179   : > { %v3324_v14 = vpop.f32.mrb[2].mxu1 }
 0x17a   : > { %v1078_v5 = vpop.f32.mrb[3].mxu1 }
 0x17f   : > { %v3327_v1 = vpop.f32.mrb[4].mxu1 }
 0x180   : > { %v1091_v13 = vpop.f32.mrb[5].mxu1 }
 0x181   : > { %v3328_v24 = vpop.f32.mrb[6].mxu1 }
 0x182   : > { %v1094_v8 = vpop.f32.mrb[7].mxu1 }
 0x185   : > { %v3413_v0 = vpop.f32.mrb[0].mxu0 }
 0x186   : > { %v3429_v27 = vadd.f32 %v3413_v0, %v3323_v3  ;;  %v2546_v34 = vpop.f32.mrb[1].mxu0 }
 0x187   : > { %v3430_v2 = vadd.f32 %v2546_v34, %v1075_v63  ;;  %v3414_v9 = vpop.f32.mrb[2].mxu0 }
 0x188   : > { %v2634_v61 = vadd.f32 %v3429_v27, %v4634_v32  ;;  %v3431_v6 = vadd.f32 %v3414_v9, %v3324_v14  ;;  %v2549_v42 = vpop.f32.mrb[3].mxu0 }
 0x189   : > { %v2632_v22 = vadd.f32 %v3430_v2, %v4634_v32  ;;  %v3432_v7 = vadd.f32 %v2549_v42, %v1078_v5 }
 0x18a   : > { %v2635_v33 = vadd.f32 %v3431_v6, %v4634_v32  ;;  %v2650_v36 = vmax.f32 %v2634_v61, 0.0 }
 0x18b   : > { %v2633_v25 = vadd.f32 %v3432_v7, %v4634_v32  ;;  %v2648_v53 = vmax.f32 %v2632_v22, 0.0 }
 0x18c   : > { %v2651_v20 = vmax.f32 %v2635_v33, 0.0 }
 0x18d   : > { %v2649_v57 = vmax.f32 %v2633_v25, 0.0  ;;  %v3417_v52 = vpop.f32.mrb[4].mxu0 }
 0x18e   : > { %v3145_v21 = vpack.c.bf16 %v2651_v20, %v2650_v36  ;;  %v3433_v31 = vadd.f32 %v3417_v52, %v3327_v1  ;;  %v2562_v39 = vpop.f32.mrb[5].mxu0 }
 0x18f   : > { %v3140_v26 = vpack.c.bf16 %v2649_v57, %v2648_v53  ;;  %v3434_v55 = vadd.f32 %v2562_v39, %v1091_v13  ;;  %v3418_v19 = vpop.f32.mrb[6].mxu0 }
 0x190   : > { %3177 = vst [vmem:[%s4643_s8 + $0x8] sm:$0xff] %v3145_v21   ;;  %v2638_v10 = vadd.f32 %v3433_v31, %v4634_v32  ;;  %v3435_v38 = vadd.f32 %v3418_v19, %v3328_v24  ;;  %v2565_v44 = vpop.f32.mrb[7].mxu0 }
 0x191   : > { %3141 = vst [vmem:[%s4643_s8] sm:$0xff] %v3140_v26   ;;  %v2636_v43 = vadd.f32 %v3434_v55, %v4634_v32  ;;  %v3436_v45 = vadd.f32 %v2565_v44, %v1094_v8 }
 0x192   : > { %v2639_v56 = vadd.f32 %v3435_v38, %v4634_v32  ;;  %v2654_v11 = vmax.f32 %v2638_v10, 0.0 }
 0x193   : > { %v2637_v28 = vadd.f32 %v3436_v45, %v4634_v32  ;;  %v2652_v41 = vmax.f32 %v2636_v43, 0.0 }
 0x194   : > { %v2655_v15 = vmax.f32 %v2639_v56, 0.0 }
 0x195   : > { %v2653_v40 = vmax.f32 %v2637_v28, 0.0  ;;  %v3421_v59 = vpop.f32.mrb[8].mxu0 }
 0x196   : > { %v3155_v18 = vpack.c.bf16 %v2655_v15, %v2654_v11  ;;  %v2578_v47 = vpop.f32.mrb[9].mxu0 }
 0x197   : > { %v3349_v4 = vpop.f32.mrb[8].mxu1  ;;  %v3150_v51 = vpack.c.bf16 %v2653_v40, %v2652_v41  ;;  %v3422_v49 = vpop.f32.mrb[10].mxu0 }
 0x198   : > { %v3437_v37 = vadd.f32 %v3421_v59, %v3349_v4  ;;  %v1489_v16 = vpop.f32.mrb[9].mxu1  ;;  %3179 = vst [vmem:[%s4643_s8 + $0x18] sm:$0xff] %v3155_v18   ;;  %v2581_v58 = vpop.f32.mrb[11].mxu0 }
 0x199   : > { %v3438_v30 = vadd.f32 %v2578_v47, %v1489_v16  ;;  %v3350_v12 = vpop.f32.mrb[10].mxu1  ;;  %3178 = vst [vmem:[%s4643_s8 + $0x10] sm:$0xff] %v3150_v51  }
 0x19a   : > { %v2642_v23 = vadd.f32 %v3437_v37, %v4634_v32  ;;  %v3439_v46 = vadd.f32 %v3422_v49, %v3350_v12  ;;  %v1492_v54 = vpop.f32.mrb[11].mxu1 }
 0x19b   : > { %v2640_v62 = vadd.f32 %v3438_v30, %v4634_v32  ;;  %v3440_v48 = vadd.f32 %v2581_v58, %v1492_v54 }
 0x19c   : > { %v2643_v50 = vadd.f32 %v3439_v46, %v4634_v32  ;;  %v2658_v17 = vmax.f32 %v2642_v23, 0.0 }
 0x19d   : > { %v2641_v60 = vadd.f32 %v3440_v48, %v4634_v32  ;;  %v3425_v35 = vpop.f32.mrb[12].mxu0  ;;  %v2656_v3 = vmax.f32 %v2640_v62, 0.0 }
 0x19e   : > { %v2659_v29 = vmax.f32 %v2643_v50, 0.0  ;;  %v2594_v5 = vpop.f32.mrb[13].mxu0 }
 0x19f   : > { %v2657_v63 = vmax.f32 %v2641_v60, 0.0  ;;  %v3353_v14 = vpop.f32.mrb[12].mxu1  ;;  %v3426_v8 = vpop.f32.mrb[14].mxu0 }
 0x1a0   : > { %v3165_v1 = vpack.c.bf16 %v2659_v29, %v2658_v17  ;;  %v3441_v13 = vadd.f32 %v3425_v35, %v3353_v14  ;;  %v1505_v24 = vpop.f32.mrb[13].mxu1  ;;  %v2597_v2 = vpop.f32.mrb[15].mxu0 }
 0x1a1   : > { %v3160_v0 = vpack.c.bf16 %v2657_v63, %v2656_v3  ;;  %v3442_v27 = vadd.f32 %v2594_v5, %v1505_v24  ;;  %v3354_v34 = vpop.f32.mrb[14].mxu1 }
 0x1a2   : > { %3181 = vst [vmem:[%s4643_s8 + $0x28] sm:$0xff] %v3165_v1   ;;  %v2646_v9 = vadd.f32 %v3441_v13, %v4634_v32  ;;  %v3443_v61 = vadd.f32 %v3426_v8, %v3354_v34  ;;  %v1508_v6 = vpop.f32.mrb[15].mxu1 }
 0x1a3   : > { %3180 = vst [vmem:[%s4643_s8 + $0x20] sm:$0xff] %v3160_v0   ;;  %v2644_v42 = vadd.f32 %v3442_v27, %v4634_v32  ;;  %v3444_v22 = vadd.f32 %v2597_v2, %v1508_v6 }
 0x1a4   : > { %v2647_v7 = vadd.f32 %v3443_v61, %v4634_v32  ;;  %v2662_v25 = vmax.f32 %v2646_v9, 0.0 }
 0x1a5   : > { %v2645_v33 = vadd.f32 %v3444_v22, %v4634_v32  ;;  %v2660_v20 = vmax.f32 %v2644_v42, 0.0 }
 0x1a6   : > { %v2663_v36 = vmax.f32 %v2647_v7, 0.0 }
 0x1a7   : > { %v2661_v53 = vmax.f32 %v2645_v33, 0.0 }
 0x1a8   : > { %v3175_v57 = vpack.c.bf16 %v2663_v36, %v2662_v25 }
 0x1a9   : > { %v3170_v52 = vpack.c.bf16 %v2661_v53, %v2660_v20 }
 0x1aa   : > { %3183 = vst [vmem:[%s4643_s8 + $0x38] sm:$0xff] %v3175_v57  }
 0x1ab   : > { %3182 = vst [vmem:[%s4643_s8 + $0x30] sm:$0xff] %v3170_v52  }
 0x1ac   : > { %3647 = shalt.err (!%p3644_p3)
}
 0x1ad   : > { %s3648_s27 = scalar_lea.hbm %s4668_s19, 1024  ;;  %s3652_s30 = scalar_lea.hbm %s4720_s3, 4096 }
 0x1ae   : > { %p3649_p4 = scmp.ne.s32.totalorder %s4668_s19, %s3648_s27  ;;  %p3653_p9 = scmp.lt.u32.totalorder %s4668_s19, %s4720_s3 }
 0x1af   : > { %p3654_p10 = scmp.lt.u32.totalorder %s3652_s30, %s3648_s27  ;;  %p3656_p12 = scmp.lt.u32.totalorder %s3648_s27, %s4668_s19 }
 0x1b0   : > { %p3650_p7 = pnand %p3649_p4, %p3759_p5 }
 0x1b1   : > { %p3655_p11 = por %p3654_p10, %p3653_p9 }
 0x1b2   : > { %p3651_p8 = pneg %p3650_p7 }
 0x1b3   : > { %p3657_p13 = por %p3656_p12, %p3655_p11 }
 0x1b5   : > { %p3658_p0 = pnand %p3657_p13, %p3651_p8 }
 0x1b7   : > { %3661 = shalt.err (!%p3658_p0)
}
 0x1b8   : > { %s3699_s6 = smov 64   ;;  %s3700_s7 = smov 4  }
 0x1b9   : > { %3568 = dma.vmem_to_hbm [thread:$0]  (%p3759_p5), %s4670_s10, 1024, %s4668_s19, %s4676_s16, %s3699_s6, %s3699_s6, %s3700_s7  }
 0x1ba PF: > { %p3574_p1 = scmp.ge.s32.totalorder %s3696_s15, 2  ;;  %s2773_s8 = sand.u32 1, %s3684_s12  }
 0x1bb   : > { %s2774_s9 = scalar_lea.sflag [#allocation3], %s2773_s8 }
 0x1bc   : > { %p3571_p2 = pnand %p3574_p1, %p3763_p6 }
 0x1be   : > { %3679 = dma.done.wait (!%p3571_p2), %s2774_s9, 1024  }
 0x1bf   : > { %3681 = vsyncadd (!%p3571_p2), %s2774_s9, 4294966272  ;;  %p13_p3 = scmp.ge.s32.totalorder %s3746_s18, 6   ;;  %s4745_s12 = smov %s3688_s13 }
 0x1c0   : > { %s4746_s13 = smov %s3692_s14  ;;  %s4747_s14 = smov %s3757_s21 }
 0x1c1   : > { %s4748_s15 = smov %s3746_s18  ;;  %15 = sbr.rel (!%p13_p3) target bundleno = 3 (0x3), region = 77 }
 0x1c8   :  { %2779 = vsyncpa [#allocation3], 1 }
 0x1c9   :  { %2781 = vsyncpa [#allocation3 + $0x1], 1 }

</bundles_post_ra>
